<compile_context>
chip_gen: v7x
topology: tpu7x:2x2x1
jax: 0.10.0
libtpu: 0.0.40
codegen_flags: <defaults>
</compile_context>

<pallas_src>
import math

import jax
import jax.numpy as jnp
import numpy as np
from jax.experimental import pallas as pl
from jax.experimental.pallas import tpu as pltpu

# ----------------------------- problem sizes --------------------------------
S = 8            # sequence length
B = 2            # batch
D = 32           # input_dim == d_model (must equal hidden_dim, see module quirk)
NHEAD = 4
HEAD_DIM = D // NHEAD
FFN = 32         # hidden_dim == dim_feedforward
OUT = 8          # output_dim
NLAYERS = 2
EPS = 1e-5       # PyTorch LayerNorm default

PARAMS_PER_LAYER = 12


def _layer_norm(x, w, b):
    """PyTorch-style LayerNorm over the last dim (biased variance)."""
    mu = jnp.mean(x, axis=-1, keepdims=True)
    var = jnp.mean((x - mu) ** 2, axis=-1, keepdims=True)
    return (x - mu) * jax.lax.rsqrt(var + EPS) * w + b


# --------------------------- fused model kernel ------------------------------
def model_kernel(*refs):
    # refs = (x, layer0 params (12), layer1 params (12), fc_w_t, fc_b, out)
    x_ref = refs[0]
    o_ref = refs[-1]
    p = refs[1:-1]
    fc_w_t_ref = p[NLAYERS * PARAMS_PER_LAYER]
    fc_b_ref = p[NLAYERS * PARAMS_PER_LAYER + 1]

    scale = 1.0 / math.sqrt(HEAD_DIM)
    x = x_ref[...]                                         # (B*S, D), batch-major rows

    for l in range(NLAYERS):                               # static layer loop (2)
        (wqkv_t_ref, bqkv_ref, wo_t_ref, bo_ref,
         w1_t_ref, b1_ref, w2_t_ref, b2_ref,
         ln1w_ref, ln1b_ref, ln2w_ref, ln2b_ref) = p[l * PARAMS_PER_LAYER:
                                                     (l + 1) * PARAMS_PER_LAYER]
        wo_t = wo_t_ref[...]                               # (D, D) == out_proj.weight.T

        # ---- fused QKV projection over all B*S rows at once ----
        qkv = jnp.dot(x, wqkv_t_ref[...],
                      preferred_element_type=jnp.float32) + bqkv_ref[...]   # (B*S, 3D)
        q = qkv[:, 0:D].reshape(B, S, D)
        k = qkv[:, D:2 * D].reshape(B, S, D)
        v = qkv[:, 2 * D:3 * D].reshape(B, S, D)

        # ---- multi-head self attention, batched over B per head ----
        # The out-projection is absorbed into the per-head accumulation:
        #   concat_h(head_h) @ Wo^T == sum_h head_h @ Wo^T[h*HD:(h+1)*HD, :]
        attn = jnp.zeros((B * S, D), jnp.float32)
        for h in range(NHEAD):                             # static head loop (4)
            sl = slice(h * HEAD_DIM, (h + 1) * HEAD_DIM)
            qh, kh, vh = q[:, :, sl], k[:, :, sl], v[:, :, sl]   # (B, S, HD)
            s = jnp.einsum('bqd,bkd->bqk', qh, kh,
                           preferred_element_type=jnp.float32) * scale      # (B, S, S)
            s = s - jnp.max(s, axis=-1, keepdims=True)
            pexp = jnp.exp(s)
            pexp = pexp * pl.reciprocal(jnp.sum(pexp, axis=-1, keepdims=True),
                                        approx=True)
            oh = jnp.einsum('bqk,bkd->bqd', pexp, vh,
                            preferred_element_type=jnp.float32)             # (B, S, HD)
            attn = attn + jnp.dot(oh.reshape(B * S, HEAD_DIM), wo_t[sl, :],
                                  preferred_element_type=jnp.float32)       # (B*S, D)
        attn = attn + bo_ref[...]

        # ---- residual + norm1 ----
        y = _layer_norm(x + attn, ln1w_ref[...], ln1b_ref[...])

        # ---- feed-forward (relu) over all rows ----
        ff = jnp.dot(y, w1_t_ref[...],
                     preferred_element_type=jnp.float32) + b1_ref[...]
        ff = jnp.maximum(ff, 0.0)
        ff = jnp.dot(ff, w2_t_ref[...],
                     preferred_element_type=jnp.float32) + b2_ref[...]

        # ---- residual + norm2 ----
        x = _layer_norm(y + ff, ln2w_ref[...], ln2b_ref[...])

    # ---- mean over sequence + final fc (fused head) ----
    m = jnp.sum(x.reshape(B, S, D), axis=1) * (1.0 / S)    # (B, D)
    o_ref[...] = (jnp.dot(m, fc_w_t_ref[...],
                          preferred_element_type=jnp.float32) + fc_b_ref[...])


# ------------------------------- wrapper --------------------------------------
_VMEM = pl.BlockSpec(memory_space=pltpu.MemorySpace.VMEM)


def transformer_model(x_sbd, flat_params):
    """x_sbd: (S, B, D) float32 (PyTorch batch_first=False convention)."""
    # Boundary layout fix-up: batch-major flat rows (row = b*S + s). One tiny XLA op
    # inside the same jit; everything else runs in a single VMEM-resident pallas_call.
    x = jnp.transpose(x_sbd, (1, 0, 2)).reshape(B * S, D).astype(jnp.float32)
    return pl.pallas_call(
        model_kernel,
        out_shape=jax.ShapeDtypeStruct((B, OUT), jnp.float32),
        in_specs=[_VMEM] * (1 + len(flat_params)),
        out_specs=_VMEM,
    )(x, *flat_params)


# --------------------------- pure-JAX reference ------------------------------
def _reference(x_sbd, layer_params, fc_w_t, fc_b):
    x = jnp.transpose(x_sbd, (1, 0, 2)).astype(jnp.float32)        # (B, S, D)
    for (wqkv_t, bqkv, wo_t, bo, w1_t, b1, w2_t, b2,
         ln1w, ln1b, ln2w, ln2b) in layer_params:
        qkv = x @ wqkv_t + bqkv                                     # (B, S, 3D)
        q, k, v = qkv[..., :D], qkv[..., D:2 * D], qkv[..., 2 * D:]
        outs = []
        for h in range(NHEAD):
            sl = slice(h * HEAD_DIM, (h + 1) * HEAD_DIM)
            s = jnp.einsum("bqd,bkd->bqk", q[..., sl], k[..., sl]) / math.sqrt(HEAD_DIM)
            p = jax.nn.softmax(s, axis=-1)
            outs.append(jnp.einsum("bqk,bkd->bqd", p, v[..., sl]))
        attn = jnp.concatenate(outs, axis=-1) @ wo_t + bo
        y = _layer_norm(x + attn, ln1w, ln1b)
        ff = jnp.maximum(y @ w1_t + b1, 0.0) @ w2_t + b2
        x = _layer_norm(y + ff, ln2w, ln2b)
    m = jnp.mean(x, axis=1)
    return m @ fc_w_t + fc_b


# ------------------------------- init / main ---------------------------------
def _init_params(key):
    layer_params = []
    for _ in range(NLAYERS):
        ks = jax.random.split(key, 7)
        key = ks[0]
        wqkv = 0.05 * jax.random.normal(ks[1], (3 * D, D), jnp.float32)
        bqkv = 0.01 * jax.random.normal(ks[2], (3 * D,), jnp.float32)
        wo = 0.05 * jax.random.normal(ks[3], (D, D), jnp.float32)
        bo = jnp.zeros((D,), jnp.float32)
        w1 = 0.05 * jax.random.normal(ks[4], (FFN, D), jnp.float32)
        b1 = 0.01 * jax.random.normal(ks[5], (FFN,), jnp.float32)
        w2 = 0.05 * jax.random.normal(ks[6], (D, FFN), jnp.float32)
        b2 = jnp.zeros((D,), jnp.float32)
        ln1w = jnp.ones((D,), jnp.float32); ln1b = jnp.zeros((D,), jnp.float32)
        ln2w = jnp.ones((D,), jnp.float32); ln2b = jnp.zeros((D,), jnp.float32)
        layer_params.append((
            wqkv.T, bqkv.reshape(1, -1),
            wo.T,   bo.reshape(1, -1),
            w1.T,   b1.reshape(1, -1),
            w2.T,   b2.reshape(1, -1),
            ln1w.reshape(1, -1), ln1b.reshape(1, -1),
            ln2w.reshape(1, -1), ln2b.reshape(1, -1),
        ))
    k1, k2 = jax.random.split(key)
    fc_w = 0.05 * jax.random.normal(k1, (OUT, D), jnp.float32)   # Linear(hidden_dim, output_dim)
    fc_b = 0.01 * jax.random.normal(k2, (OUT,), jnp.float32)
    return layer_params, fc_w.T, fc_b.reshape(1, -1)


if __name__ == "__main__":
    root = jax.random.PRNGKey(0)
    kx, kp = jax.random.split(root)
    x = jax.random.normal(kx, (S, B, D), jnp.float32)     # (seq, batch, d_model)
    layer_params, fc_w_t, fc_b = _init_params(kp)
    flat_params = tuple(p for lp in layer_params for p in lp) + (fc_w_t, fc_b)

    run = jax.jit(lambda xx: transformer_model(xx, flat_params))
    out = jax.block_until_ready(run(x))                   # (B, OUT)

    ref = _reference(x, layer_params, fc_w_t, fc_b)
    # Tolerance accommodates the EUP approximate reciprocal (pl.reciprocal(approx=True))
    # used for the softmax normalization per the perf review; with approx=False the
    # kernel matches the f32 reference to ~1e-5.
    np.testing.assert_allclose(np.asarray(out), np.asarray(ref), rtol=5e-3, atol=5e-3)

    print("KERNEL_OK")
</pallas_src>

<mosaic_0001>
module attributes {stable_mosaic.version = 11 : i64} {
  func.func @model_kernel(%arg0: memref<16x32xf32, #tpu.memory_space<vmem>>, %arg1: memref<32x96xf32, #tpu.memory_space<vmem>>, %arg2: memref<1x96xf32, #tpu.memory_space<vmem>>, %arg3: memref<32x32xf32, #tpu.memory_space<vmem>>, %arg4: memref<1x32xf32, #tpu.memory_space<vmem>>, %arg5: memref<32x32xf32, #tpu.memory_space<vmem>>, %arg6: memref<1x32xf32, #tpu.memory_space<vmem>>, %arg7: memref<32x32xf32, #tpu.memory_space<vmem>>, %arg8: memref<1x32xf32, #tpu.memory_space<vmem>>, %arg9: memref<1x32xf32, #tpu.memory_space<vmem>>, %arg10: memref<1x32xf32, #tpu.memory_space<vmem>>, %arg11: memref<1x32xf32, #tpu.memory_space<vmem>>, %arg12: memref<1x32xf32, #tpu.memory_space<vmem>>, %arg13: memref<32x96xf32, #tpu.memory_space<vmem>>, %arg14: memref<1x96xf32, #tpu.memory_space<vmem>>, %arg15: memref<32x32xf32, #tpu.memory_space<vmem>>, %arg16: memref<1x32xf32, #tpu.memory_space<vmem>>, %arg17: memref<32x32xf32, #tpu.memory_space<vmem>>, %arg18: memref<1x32xf32, #tpu.memory_space<vmem>>, %arg19: memref<32x32xf32, #tpu.memory_space<vmem>>, %arg20: memref<1x32xf32, #tpu.memory_space<vmem>>, %arg21: memref<1x32xf32, #tpu.memory_space<vmem>>, %arg22: memref<1x32xf32, #tpu.memory_space<vmem>>, %arg23: memref<1x32xf32, #tpu.memory_space<vmem>>, %arg24: memref<1x32xf32, #tpu.memory_space<vmem>>, %arg25: memref<32x8xf32, #tpu.memory_space<vmem>>, %arg26: memref<1x8xf32, #tpu.memory_space<vmem>>, %arg27: memref<2x8xf32, #tpu.memory_space<vmem>>) attributes {dimension_semantics = [], scalar_prefetch = 0 : i64, scratch_operands = 0 : i64, tpu.core_type = #tpu.core_type<tc>} {
    %c0 = arith.constant 0 : index
    %c0_0 = arith.constant 0 : index
    %0 = vector.load %arg0[%c0, %c0_0] : memref<16x32xf32, #tpu.memory_space<vmem>>, vector<16x32xf32>
    %c0_1 = arith.constant 0 : index
    %c0_2 = arith.constant 0 : index
    %1 = vector.load %arg3[%c0_1, %c0_2] : memref<32x32xf32, #tpu.memory_space<vmem>>, vector<32x32xf32>
    %c0_3 = arith.constant 0 : index
    %c0_4 = arith.constant 0 : index
    %2 = vector.load %arg1[%c0_3, %c0_4] : memref<32x96xf32, #tpu.memory_space<vmem>>, vector<32x96xf32>
    %cst = arith.constant dense<0.000000e+00> : vector<16x96xf32>
    %3 = tpu.matmul %0, %2, %cst {dimension_numbers = #tpu.dot_dimension_numbers<[1], [0], [0], [1], [0, 0, 1, 1], [], []>} : vector<16x32xf32>, vector<32x96xf32>, vector<16x96xf32> -> vector<16x96xf32>
    %c0_5 = arith.constant 0 : index
    %c0_6 = arith.constant 0 : index
    %4 = vector.load %arg2[%c0_5, %c0_6] : memref<1x96xf32, #tpu.memory_space<vmem>>, vector<1x96xf32>
    %5 = vector.broadcast %4 : vector<1x96xf32> to vector<16x96xf32>
    %6 = arith.addf %3, %5 : vector<16x96xf32>
    %7 = vector.extract_strided_slice %6 {offsets = [0, 0], sizes = [16, 32], strides = [1, 1]} : vector<16x96xf32> to vector<16x32xf32>
    %8 = vector.shape_cast %7 : vector<16x32xf32> to vector<2x8x32xf32>
    %9 = vector.extract_strided_slice %6 {offsets = [0, 32], sizes = [16, 32], strides = [1, 1]} : vector<16x96xf32> to vector<16x32xf32>
    %10 = vector.shape_cast %9 : vector<16x32xf32> to vector<2x8x32xf32>
    %11 = vector.extract_strided_slice %6 {offsets = [0, 64], sizes = [16, 32], strides = [1, 1]} : vector<16x96xf32> to vector<16x32xf32>
    %12 = vector.shape_cast %11 : vector<16x32xf32> to vector<2x8x32xf32>
    %cst_7 = arith.constant 0.000000e+00 : f32
    %13 = vector.broadcast %cst_7 : f32 to vector<16x32xf32>
    %14 = vector.extract_strided_slice %8 {offsets = [0, 0, 0], sizes = [2, 8, 8], strides = [1, 1, 1]} : vector<2x8x32xf32> to vector<2x8x8xf32>
    %15 = vector.extract_strided_slice %10 {offsets = [0, 0, 0], sizes = [2, 8, 8], strides = [1, 1, 1]} : vector<2x8x32xf32> to vector<2x8x8xf32>
    %16 = vector.extract_strided_slice %12 {offsets = [0, 0, 0], sizes = [2, 8, 8], strides = [1, 1, 1]} : vector<2x8x32xf32> to vector<2x8x8xf32>
    "tpu.trace_start"() <{level = 10 : i32, message = "bqd,bkd->bqk"}> : () -> ()
    %cst_8 = arith.constant dense<0.000000e+00> : vector<2x8x8xf32>
    %17 = tpu.matmul %14, %15, %cst_8 {dimension_numbers = #tpu.dot_dimension_numbers<[2], [2], [1], [1], [0, 0, 0, 1, 1, 1], [0], [0]>} : vector<2x8x8xf32>, vector<2x8x8xf32>, vector<2x8x8xf32> -> vector<2x8x8xf32>
    "tpu.trace_stop"() : () -> ()
    %cst_9 = arith.constant 0.353553385 : f32
    %18 = vector.broadcast %cst_9 : f32 to vector<2x8x8xf32>
    %19 = arith.mulf %17, %18 : vector<2x8x8xf32>
    %cst_10 = arith.constant dense<0xFF800000> : vector<2x8xf32>
    %20 = vector.multi_reduction <maximumf>, %19, %cst_10 [2] : vector<2x8x8xf32> to vector<2x8xf32>
    %21 = vector.shape_cast %20 : vector<2x8xf32> to vector<2x8x1xf32>
    %22 = vector.broadcast %21 : vector<2x8x1xf32> to vector<2x8x8xf32>
    %23 = arith.subf %19, %22 : vector<2x8x8xf32>
    %24 = math.exp %23 : vector<2x8x8xf32>
    %cst_11 = arith.constant dense<0.000000e+00> : vector<2x8xf32>
    %25 = vector.multi_reduction <add>, %24, %cst_11 [2] : vector<2x8x8xf32> to vector<2x8xf32>
    %26 = vector.shape_cast %25 : vector<2x8xf32> to vector<2x8x1xf32>
    %27 = tpu.reciprocal %26 {approx = true} : vector<2x8x1xf32> -> vector<2x8x1xf32>
    %28 = vector.broadcast %27 : vector<2x8x1xf32> to vector<2x8x8xf32>
    %29 = arith.mulf %24, %28 : vector<2x8x8xf32>
    "tpu.trace_start"() <{level = 10 : i32, message = "bqk,bkd->bqd"}> : () -> ()
    %cst_12 = arith.constant dense<0.000000e+00> : vector<2x8x8xf32>
    %30 = tpu.matmul %29, %16, %cst_12 {dimension_numbers = #tpu.dot_dimension_numbers<[2], [1], [1], [2], [0, 0, 0, 1, 1, 2], [0], [0]>} : vector<2x8x8xf32>, vector<2x8x8xf32>, vector<2x8x8xf32> -> vector<2x8x8xf32>
    "tpu.trace_stop"() : () -> ()
    %31 = vector.shape_cast %30 : vector<2x8x8xf32> to vector<16x8xf32>
    %32 = vector.extract_strided_slice %1 {offsets = [0, 0], sizes = [8, 32], strides = [1, 1]} : vector<32x32xf32> to vector<8x32xf32>
    %cst_13 = arith.constant dense<0.000000e+00> : vector<16x32xf32>
    %33 = tpu.matmul %31, %32, %cst_13 {dimension_numbers = #tpu.dot_dimension_numbers<[1], [0], [0], [1], [0, 0, 1, 1], [], []>} : vector<16x8xf32>, vector<8x32xf32>, vector<16x32xf32> -> vector<16x32xf32>
    %34 = arith.addf %13, %33 : vector<16x32xf32>
    %35 = vector.extract_strided_slice %8 {offsets = [0, 0, 8], sizes = [2, 8, 8], strides = [1, 1, 1]} : vector<2x8x32xf32> to vector<2x8x8xf32>
    %36 = vector.extract_strided_slice %10 {offsets = [0, 0, 8], sizes = [2, 8, 8], strides = [1, 1, 1]} : vector<2x8x32xf32> to vector<2x8x8xf32>
    %37 = vector.extract_strided_slice %12 {offsets = [0, 0, 8], sizes = [2, 8, 8], strides = [1, 1, 1]} : vector<2x8x32xf32> to vector<2x8x8xf32>
    "tpu.trace_start"() <{level = 10 : i32, message = "bqd,bkd->bqk"}> : () -> ()
    %cst_14 = arith.constant dense<0.000000e+00> : vector<2x8x8xf32>
    %38 = tpu.matmul %35, %36, %cst_14 {dimension_numbers = #tpu.dot_dimension_numbers<[2], [2], [1], [1], [0, 0, 0, 1, 1, 1], [0], [0]>} : vector<2x8x8xf32>, vector<2x8x8xf32>, vector<2x8x8xf32> -> vector<2x8x8xf32>
    "tpu.trace_stop"() : () -> ()
    %cst_15 = arith.constant 0.353553385 : f32
    %39 = vector.broadcast %cst_15 : f32 to vector<2x8x8xf32>
    %40 = arith.mulf %38, %39 : vector<2x8x8xf32>
    %cst_16 = arith.constant dense<0xFF800000> : vector<2x8xf32>
    %41 = vector.multi_reduction <maximumf>, %40, %cst_16 [2] : vector<2x8x8xf32> to vector<2x8xf32>
    %42 = vector.shape_cast %41 : vector<2x8xf32> to vector<2x8x1xf32>
    %43 = vector.broadcast %42 : vector<2x8x1xf32> to vector<2x8x8xf32>
    %44 = arith.subf %40, %43 : vector<2x8x8xf32>
    %45 = math.exp %44 : vector<2x8x8xf32>
    %cst_17 = arith.constant dense<0.000000e+00> : vector<2x8xf32>
    %46 = vector.multi_reduction <add>, %45, %cst_17 [2] : vector<2x8x8xf32> to vector<2x8xf32>
    %47 = vector.shape_cast %46 : vector<2x8xf32> to vector<2x8x1xf32>
    %48 = tpu.reciprocal %47 {approx = true} : vector<2x8x1xf32> -> vector<2x8x1xf32>
    %49 = vector.broadcast %48 : vector<2x8x1xf32> to vector<2x8x8xf32>
    %50 = arith.mulf %45, %49 : vector<2x8x8xf32>
    "tpu.trace_start"() <{level = 10 : i32, message = "bqk,bkd->bqd"}> : () -> ()
    %cst_18 = arith.constant dense<0.000000e+00> : vector<2x8x8xf32>
    %51 = tpu.matmul %50, %37, %cst_18 {dimension_numbers = #tpu.dot_dimension_numbers<[2], [1], [1], [2], [0, 0, 0, 1, 1, 2], [0], [0]>} : vector<2x8x8xf32>, vector<2x8x8xf32>, vector<2x8x8xf32> -> vector<2x8x8xf32>
    "tpu.trace_stop"() : () -> ()
    %52 = vector.shape_cast %51 : vector<2x8x8xf32> to vector<16x8xf32>
    %53 = vector.extract_strided_slice %1 {offsets = [8, 0], sizes = [8, 32], strides = [1, 1]} : vector<32x32xf32> to vector<8x32xf32>
    %cst_19 = arith.constant dense<0.000000e+00> : vector<16x32xf32>
    %54 = tpu.matmul %52, %53, %cst_19 {dimension_numbers = #tpu.dot_dimension_numbers<[1], [0], [0], [1], [0, 0, 1, 1], [], []>} : vector<16x8xf32>, vector<8x32xf32>, vector<16x32xf32> -> vector<16x32xf32>
    %55 = arith.addf %34, %54 : vector<16x32xf32>
    %56 = vector.extract_strided_slice %8 {offsets = [0, 0, 16], sizes = [2, 8, 8], strides = [1, 1, 1]} : vector<2x8x32xf32> to vector<2x8x8xf32>
    %57 = vector.extract_strided_slice %10 {offsets = [0, 0, 16], sizes = [2, 8, 8], strides = [1, 1, 1]} : vector<2x8x32xf32> to vector<2x8x8xf32>
    %58 = vector.extract_strided_slice %12 {offsets = [0, 0, 16], sizes = [2, 8, 8], strides = [1, 1, 1]} : vector<2x8x32xf32> to vector<2x8x8xf32>
    "tpu.trace_start"() <{level = 10 : i32, message = "bqd,bkd->bqk"}> : () -> ()
    %cst_20 = arith.constant dense<0.000000e+00> : vector<2x8x8xf32>
    %59 = tpu.matmul %56, %57, %cst_20 {dimension_numbers = #tpu.dot_dimension_numbers<[2], [2], [1], [1], [0, 0, 0, 1, 1, 1], [0], [0]>} : vector<2x8x8xf32>, vector<2x8x8xf32>, vector<2x8x8xf32> -> vector<2x8x8xf32>
    "tpu.trace_stop"() : () -> ()
    %cst_21 = arith.constant 0.353553385 : f32
    %60 = vector.broadcast %cst_21 : f32 to vector<2x8x8xf32>
    %61 = arith.mulf %59, %60 : vector<2x8x8xf32>
    %cst_22 = arith.constant dense<0xFF800000> : vector<2x8xf32>
    %62 = vector.multi_reduction <maximumf>, %61, %cst_22 [2] : vector<2x8x8xf32> to vector<2x8xf32>
    %63 = vector.shape_cast %62 : vector<2x8xf32> to vector<2x8x1xf32>
    %64 = vector.broadcast %63 : vector<2x8x1xf32> to vector<2x8x8xf32>
    %65 = arith.subf %61, %64 : vector<2x8x8xf32>
    %66 = math.exp %65 : vector<2x8x8xf32>
    %cst_23 = arith.constant dense<0.000000e+00> : vector<2x8xf32>
    %67 = vector.multi_reduction <add>, %66, %cst_23 [2] : vector<2x8x8xf32> to vector<2x8xf32>
    %68 = vector.shape_cast %67 : vector<2x8xf32> to vector<2x8x1xf32>
    %69 = tpu.reciprocal %68 {approx = true} : vector<2x8x1xf32> -> vector<2x8x1xf32>
    %70 = vector.broadcast %69 : vector<2x8x1xf32> to vector<2x8x8xf32>
    %71 = arith.mulf %66, %70 : vector<2x8x8xf32>
    "tpu.trace_start"() <{level = 10 : i32, message = "bqk,bkd->bqd"}> : () -> ()
    %cst_24 = arith.constant dense<0.000000e+00> : vector<2x8x8xf32>
    %72 = tpu.matmul %71, %58, %cst_24 {dimension_numbers = #tpu.dot_dimension_numbers<[2], [1], [1], [2], [0, 0, 0, 1, 1, 2], [0], [0]>} : vector<2x8x8xf32>, vector<2x8x8xf32>, vector<2x8x8xf32> -> vector<2x8x8xf32>
    "tpu.trace_stop"() : () -> ()
    %73 = vector.shape_cast %72 : vector<2x8x8xf32> to vector<16x8xf32>
    %74 = vector.extract_strided_slice %1 {offsets = [16, 0], sizes = [8, 32], strides = [1, 1]} : vector<32x32xf32> to vector<8x32xf32>
    %cst_25 = arith.constant dense<0.000000e+00> : vector<16x32xf32>
    %75 = tpu.matmul %73, %74, %cst_25 {dimension_numbers = #tpu.dot_dimension_numbers<[1], [0], [0], [1], [0, 0, 1, 1], [], []>} : vector<16x8xf32>, vector<8x32xf32>, vector<16x32xf32> -> vector<16x32xf32>
    %76 = arith.addf %55, %75 : vector<16x32xf32>
    %77 = vector.extract_strided_slice %8 {offsets = [0, 0, 24], sizes = [2, 8, 8], strides = [1, 1, 1]} : vector<2x8x32xf32> to vector<2x8x8xf32>
    %78 = vector.extract_strided_slice %10 {offsets = [0, 0, 24], sizes = [2, 8, 8], strides = [1, 1, 1]} : vector<2x8x32xf32> to vector<2x8x8xf32>
    %79 = vector.extract_strided_slice %12 {offsets = [0, 0, 24], sizes = [2, 8, 8], strides = [1, 1, 1]} : vector<2x8x32xf32> to vector<2x8x8xf32>
    "tpu.trace_start"() <{level = 10 : i32, message = "bqd,bkd->bqk"}> : () -> ()
    %cst_26 = arith.constant dense<0.000000e+00> : vector<2x8x8xf32>
    %80 = tpu.matmul %77, %78, %cst_26 {dimension_numbers = #tpu.dot_dimension_numbers<[2], [2], [1], [1], [0, 0, 0, 1, 1, 1], [0], [0]>} : vector<2x8x8xf32>, vector<2x8x8xf32>, vector<2x8x8xf32> -> vector<2x8x8xf32>
    "tpu.trace_stop"() : () -> ()
    %cst_27 = arith.constant 0.353553385 : f32
    %81 = vector.broadcast %cst_27 : f32 to vector<2x8x8xf32>
    %82 = arith.mulf %80, %81 : vector<2x8x8xf32>
    %cst_28 = arith.constant dense<0xFF800000> : vector<2x8xf32>
    %83 = vector.multi_reduction <maximumf>, %82, %cst_28 [2] : vector<2x8x8xf32> to vector<2x8xf32>
    %84 = vector.shape_cast %83 : vector<2x8xf32> to vector<2x8x1xf32>
    %85 = vector.broadcast %84 : vector<2x8x1xf32> to vector<2x8x8xf32>
    %86 = arith.subf %82, %85 : vector<2x8x8xf32>
    %87 = math.exp %86 : vector<2x8x8xf32>
    %cst_29 = arith.constant dense<0.000000e+00> : vector<2x8xf32>
    %88 = vector.multi_reduction <add>, %87, %cst_29 [2] : vector<2x8x8xf32> to vector<2x8xf32>
    %89 = vector.shape_cast %88 : vector<2x8xf32> to vector<2x8x1xf32>
    %90 = tpu.reciprocal %89 {approx = true} : vector<2x8x1xf32> -> vector<2x8x1xf32>
    %91 = vector.broadcast %90 : vector<2x8x1xf32> to vector<2x8x8xf32>
    %92 = arith.mulf %87, %91 : vector<2x8x8xf32>
    "tpu.trace_start"() <{level = 10 : i32, message = "bqk,bkd->bqd"}> : () -> ()
    %cst_30 = arith.constant dense<0.000000e+00> : vector<2x8x8xf32>
    %93 = tpu.matmul %92, %79, %cst_30 {dimension_numbers = #tpu.dot_dimension_numbers<[2], [1], [1], [2], [0, 0, 0, 1, 1, 2], [0], [0]>} : vector<2x8x8xf32>, vector<2x8x8xf32>, vector<2x8x8xf32> -> vector<2x8x8xf32>
    "tpu.trace_stop"() : () -> ()
    %94 = vector.shape_cast %93 : vector<2x8x8xf32> to vector<16x8xf32>
    %95 = vector.extract_strided_slice %1 {offsets = [24, 0], sizes = [8, 32], strides = [1, 1]} : vector<32x32xf32> to vector<8x32xf32>
    %cst_31 = arith.constant dense<0.000000e+00> : vector<16x32xf32>
    %96 = tpu.matmul %94, %95, %cst_31 {dimension_numbers = #tpu.dot_dimension_numbers<[1], [0], [0], [1], [0, 0, 1, 1], [], []>} : vector<16x8xf32>, vector<8x32xf32>, vector<16x32xf32> -> vector<16x32xf32>
    %97 = arith.addf %76, %96 : vector<16x32xf32>
    %c0_32 = arith.constant 0 : index
    %c0_33 = arith.constant 0 : index
    %98 = vector.load %arg4[%c0_32, %c0_33] : memref<1x32xf32, #tpu.memory_space<vmem>>, vector<1x32xf32>
    %99 = vector.broadcast %98 : vector<1x32xf32> to vector<16x32xf32>
    %100 = arith.addf %97, %99 : vector<16x32xf32>
    %101 = arith.addf %0, %100 : vector<16x32xf32>
    %c0_34 = arith.constant 0 : index
    %c0_35 = arith.constant 0 : index
    %102 = vector.load %arg9[%c0_34, %c0_35] : memref<1x32xf32, #tpu.memory_space<vmem>>, vector<1x32xf32>
    %c0_36 = arith.constant 0 : index
    %c0_37 = arith.constant 0 : index
    %103 = vector.load %arg10[%c0_36, %c0_37] : memref<1x32xf32, #tpu.memory_space<vmem>>, vector<1x32xf32>
    %cst_38 = arith.constant dense<0.000000e+00> : vector<16xf32>
    %104 = vector.multi_reduction <add>, %101, %cst_38 [1] : vector<16x32xf32> to vector<16xf32>
    %105 = vector.shape_cast %104 : vector<16xf32> to vector<16x1xf32>
    %cst_39 = arith.constant 3.200000e+01 : f32
    %106 = vector.broadcast %cst_39 : f32 to vector<16x1xf32>
    %107 = arith.divf %105, %106 : vector<16x1xf32>
    %108 = vector.broadcast %107 : vector<16x1xf32> to vector<16x32xf32>
    %109 = arith.subf %101, %108 : vector<16x32xf32>
    %110 = arith.mulf %109, %109 : vector<16x32xf32>
    %cst_40 = arith.constant dense<0.000000e+00> : vector<16xf32>
    %111 = vector.multi_reduction <add>, %110, %cst_40 [1] : vector<16x32xf32> to vector<16xf32>
    %112 = vector.shape_cast %111 : vector<16xf32> to vector<16x1xf32>
    %cst_41 = arith.constant 3.200000e+01 : f32
    %113 = vector.broadcast %cst_41 : f32 to vector<16x1xf32>
    %114 = arith.divf %112, %113 : vector<16x1xf32>
    %115 = vector.broadcast %107 : vector<16x1xf32> to vector<16x32xf32>
    %116 = arith.subf %101, %115 : vector<16x32xf32>
    %cst_42 = arith.constant 9.99999974E-6 : f32
    %117 = vector.broadcast %cst_42 : f32 to vector<16x1xf32>
    %118 = arith.addf %114, %117 : vector<16x1xf32>
    %119 = math.rsqrt %118 : vector<16x1xf32>
    %120 = vector.broadcast %119 : vector<16x1xf32> to vector<16x32xf32>
    %121 = arith.mulf %116, %120 : vector<16x32xf32>
    %122 = vector.broadcast %102 : vector<1x32xf32> to vector<16x32xf32>
    %123 = arith.mulf %121, %122 : vector<16x32xf32>
    %124 = vector.broadcast %103 : vector<1x32xf32> to vector<16x32xf32>
    %125 = arith.addf %123, %124 : vector<16x32xf32>
    %c0_43 = arith.constant 0 : index
    %c0_44 = arith.constant 0 : index
    %126 = vector.load %arg5[%c0_43, %c0_44] : memref<32x32xf32, #tpu.memory_space<vmem>>, vector<32x32xf32>
    %cst_45 = arith.constant dense<0.000000e+00> : vector<16x32xf32>
    %127 = tpu.matmul %125, %126, %cst_45 {dimension_numbers = #tpu.dot_dimension_numbers<[1], [0], [0], [1], [0, 0, 1, 1], [], []>} : vector<16x32xf32>, vector<32x32xf32>, vector<16x32xf32> -> vector<16x32xf32>
    %c0_46 = arith.constant 0 : index
    %c0_47 = arith.constant 0 : index
    %128 = vector.load %arg6[%c0_46, %c0_47] : memref<1x32xf32, #tpu.memory_space<vmem>>, vector<1x32xf32>
    %129 = vector.broadcast %128 : vector<1x32xf32> to vector<16x32xf32>
    %130 = arith.addf %127, %129 : vector<16x32xf32>
    %cst_48 = arith.constant 0.000000e+00 : f32
    %131 = vector.broadcast %cst_48 : f32 to vector<16x32xf32>
    %132 = arith.maximumf %130, %131 : vector<16x32xf32>
    %c0_49 = arith.constant 0 : index
    %c0_50 = arith.constant 0 : index
    %133 = vector.load %arg7[%c0_49, %c0_50] : memref<32x32xf32, #tpu.memory_space<vmem>>, vector<32x32xf32>
    %cst_51 = arith.constant dense<0.000000e+00> : vector<16x32xf32>
    %134 = tpu.matmul %132, %133, %cst_51 {dimension_numbers = #tpu.dot_dimension_numbers<[1], [0], [0], [1], [0, 0, 1, 1], [], []>} : vector<16x32xf32>, vector<32x32xf32>, vector<16x32xf32> -> vector<16x32xf32>
    %c0_52 = arith.constant 0 : index
    %c0_53 = arith.constant 0 : index
    %135 = vector.load %arg8[%c0_52, %c0_53] : memref<1x32xf32, #tpu.memory_space<vmem>>, vector<1x32xf32>
    %136 = vector.broadcast %135 : vector<1x32xf32> to vector<16x32xf32>
    %137 = arith.addf %134, %136 : vector<16x32xf32>
    %138 = arith.addf %125, %137 : vector<16x32xf32>
    %c0_54 = arith.constant 0 : index
    %c0_55 = arith.constant 0 : index
    %139 = vector.load %arg11[%c0_54, %c0_55] : memref<1x32xf32, #tpu.memory_space<vmem>>, vector<1x32xf32>
    %c0_56 = arith.constant 0 : index
    %c0_57 = arith.constant 0 : index
    %140 = vector.load %arg12[%c0_56, %c0_57] : memref<1x32xf32, #tpu.memory_space<vmem>>, vector<1x32xf32>
    %cst_58 = arith.constant dense<0.000000e+00> : vector<16xf32>
    %141 = vector.multi_reduction <add>, %138, %cst_58 [1] : vector<16x32xf32> to vector<16xf32>
    %142 = vector.shape_cast %141 : vector<16xf32> to vector<16x1xf32>
    %cst_59 = arith.constant 3.200000e+01 : f32
    %143 = vector.broadcast %cst_59 : f32 to vector<16x1xf32>
    %144 = arith.divf %142, %143 : vector<16x1xf32>
    %145 = vector.broadcast %144 : vector<16x1xf32> to vector<16x32xf32>
    %146 = arith.subf %138, %145 : vector<16x32xf32>
    %147 = arith.mulf %146, %146 : vector<16x32xf32>
    %cst_60 = arith.constant dense<0.000000e+00> : vector<16xf32>
    %148 = vector.multi_reduction <add>, %147, %cst_60 [1] : vector<16x32xf32> to vector<16xf32>
    %149 = vector.shape_cast %148 : vector<16xf32> to vector<16x1xf32>
    %cst_61 = arith.constant 3.200000e+01 : f32
    %150 = vector.broadcast %cst_61 : f32 to vector<16x1xf32>
    %151 = arith.divf %149, %150 : vector<16x1xf32>
    %152 = vector.broadcast %144 : vector<16x1xf32> to vector<16x32xf32>
    %153 = arith.subf %138, %152 : vector<16x32xf32>
    %cst_62 = arith.constant 9.99999974E-6 : f32
    %154 = vector.broadcast %cst_62 : f32 to vector<16x1xf32>
    %155 = arith.addf %151, %154 : vector<16x1xf32>
    %156 = math.rsqrt %155 : vector<16x1xf32>
    %157 = vector.broadcast %156 : vector<16x1xf32> to vector<16x32xf32>
    %158 = arith.mulf %153, %157 : vector<16x32xf32>
    %159 = vector.broadcast %139 : vector<1x32xf32> to vector<16x32xf32>
    %160 = arith.mulf %158, %159 : vector<16x32xf32>
    %161 = vector.broadcast %140 : vector<1x32xf32> to vector<16x32xf32>
    %162 = arith.addf %160, %161 : vector<16x32xf32>
    %c0_63 = arith.constant 0 : index
    %c0_64 = arith.constant 0 : index
    %163 = vector.load %arg15[%c0_63, %c0_64] : memref<32x32xf32, #tpu.memory_space<vmem>>, vector<32x32xf32>
    %c0_65 = arith.constant 0 : index
    %c0_66 = arith.constant 0 : index
    %164 = vector.load %arg13[%c0_65, %c0_66] : memref<32x96xf32, #tpu.memory_space<vmem>>, vector<32x96xf32>
    %cst_67 = arith.constant dense<0.000000e+00> : vector<16x96xf32>
    %165 = tpu.matmul %162, %164, %cst_67 {dimension_numbers = #tpu.dot_dimension_numbers<[1], [0], [0], [1], [0, 0, 1, 1], [], []>} : vector<16x32xf32>, vector<32x96xf32>, vector<16x96xf32> -> vector<16x96xf32>
    %c0_68 = arith.constant 0 : index
    %c0_69 = arith.constant 0 : index
    %166 = vector.load %arg14[%c0_68, %c0_69] : memref<1x96xf32, #tpu.memory_space<vmem>>, vector<1x96xf32>
    %167 = vector.broadcast %166 : vector<1x96xf32> to vector<16x96xf32>
    %168 = arith.addf %165, %167 : vector<16x96xf32>
    %169 = vector.extract_strided_slice %168 {offsets = [0, 0], sizes = [16, 32], strides = [1, 1]} : vector<16x96xf32> to vector<16x32xf32>
    %170 = vector.shape_cast %169 : vector<16x32xf32> to vector<2x8x32xf32>
    %171 = vector.extract_strided_slice %168 {offsets = [0, 32], sizes = [16, 32], strides = [1, 1]} : vector<16x96xf32> to vector<16x32xf32>
    %172 = vector.shape_cast %171 : vector<16x32xf32> to vector<2x8x32xf32>
    %173 = vector.extract_strided_slice %168 {offsets = [0, 64], sizes = [16, 32], strides = [1, 1]} : vector<16x96xf32> to vector<16x32xf32>
    %174 = vector.shape_cast %173 : vector<16x32xf32> to vector<2x8x32xf32>
    %cst_70 = arith.constant 0.000000e+00 : f32
    %175 = vector.broadcast %cst_70 : f32 to vector<16x32xf32>
    %176 = vector.extract_strided_slice %170 {offsets = [0, 0, 0], sizes = [2, 8, 8], strides = [1, 1, 1]} : vector<2x8x32xf32> to vector<2x8x8xf32>
    %177 = vector.extract_strided_slice %172 {offsets = [0, 0, 0], sizes = [2, 8, 8], strides = [1, 1, 1]} : vector<2x8x32xf32> to vector<2x8x8xf32>
    %178 = vector.extract_strided_slice %174 {offsets = [0, 0, 0], sizes = [2, 8, 8], strides = [1, 1, 1]} : vector<2x8x32xf32> to vector<2x8x8xf32>
    "tpu.trace_start"() <{level = 10 : i32, message = "bqd,bkd->bqk"}> : () -> ()
    %cst_71 = arith.constant dense<0.000000e+00> : vector<2x8x8xf32>
    %179 = tpu.matmul %176, %177, %cst_71 {dimension_numbers = #tpu.dot_dimension_numbers<[2], [2], [1], [1], [0, 0, 0, 1, 1, 1], [0], [0]>} : vector<2x8x8xf32>, vector<2x8x8xf32>, vector<2x8x8xf32> -> vector<2x8x8xf32>
    "tpu.trace_stop"() : () -> ()
    %cst_72 = arith.constant 0.353553385 : f32
    %180 = vector.broadcast %cst_72 : f32 to vector<2x8x8xf32>
    %181 = arith.mulf %179, %180 : vector<2x8x8xf32>
    %cst_73 = arith.constant dense<0xFF800000> : vector<2x8xf32>
    %182 = vector.multi_reduction <maximumf>, %181, %cst_73 [2] : vector<2x8x8xf32> to vector<2x8xf32>
    %183 = vector.shape_cast %182 : vector<2x8xf32> to vector<2x8x1xf32>
    %184 = vector.broadcast %183 : vector<2x8x1xf32> to vector<2x8x8xf32>
    %185 = arith.subf %181, %184 : vector<2x8x8xf32>
    %186 = math.exp %185 : vector<2x8x8xf32>
    %cst_74 = arith.constant dense<0.000000e+00> : vector<2x8xf32>
    %187 = vector.multi_reduction <add>, %186, %cst_74 [2] : vector<2x8x8xf32> to vector<2x8xf32>
    %188 = vector.shape_cast %187 : vector<2x8xf32> to vector<2x8x1xf32>
    %189 = tpu.reciprocal %188 {approx = true} : vector<2x8x1xf32> -> vector<2x8x1xf32>
    %190 = vector.broadcast %189 : vector<2x8x1xf32> to vector<2x8x8xf32>
    %191 = arith.mulf %186, %190 : vector<2x8x8xf32>
    "tpu.trace_start"() <{level = 10 : i32, message = "bqk,bkd->bqd"}> : () -> ()
    %cst_75 = arith.constant dense<0.000000e+00> : vector<2x8x8xf32>
    %192 = tpu.matmul %191, %178, %cst_75 {dimension_numbers = #tpu.dot_dimension_numbers<[2], [1], [1], [2], [0, 0, 0, 1, 1, 2], [0], [0]>} : vector<2x8x8xf32>, vector<2x8x8xf32>, vector<2x8x8xf32> -> vector<2x8x8xf32>
    "tpu.trace_stop"() : () -> ()
    %193 = vector.shape_cast %192 : vector<2x8x8xf32> to vector<16x8xf32>
    %194 = vector.extract_strided_slice %163 {offsets = [0, 0], sizes = [8, 32], strides = [1, 1]} : vector<32x32xf32> to vector<8x32xf32>
    %cst_76 = arith.constant dense<0.000000e+00> : vector<16x32xf32>
    %195 = tpu.matmul %193, %194, %cst_76 {dimension_numbers = #tpu.dot_dimension_numbers<[1], [0], [0], [1], [0, 0, 1, 1], [], []>} : vector<16x8xf32>, vector<8x32xf32>, vector<16x32xf32> -> vector<16x32xf32>
    %196 = arith.addf %175, %195 : vector<16x32xf32>
    %197 = vector.extract_strided_slice %170 {offsets = [0, 0, 8], sizes = [2, 8, 8], strides = [1, 1, 1]} : vector<2x8x32xf32> to vector<2x8x8xf32>
    %198 = vector.extract_strided_slice %172 {offsets = [0, 0, 8], sizes = [2, 8, 8], strides = [1, 1, 1]} : vector<2x8x32xf32> to vector<2x8x8xf32>
    %199 = vector.extract_strided_slice %174 {offsets = [0, 0, 8], sizes = [2, 8, 8], strides = [1, 1, 1]} : vector<2x8x32xf32> to vector<2x8x8xf32>
    "tpu.trace_start"() <{level = 10 : i32, message = "bqd,bkd->bqk"}> : () -> ()
    %cst_77 = arith.constant dense<0.000000e+00> : vector<2x8x8xf32>
    %200 = tpu.matmul %197, %198, %cst_77 {dimension_numbers = #tpu.dot_dimension_numbers<[2], [2], [1], [1], [0, 0, 0, 1, 1, 1], [0], [0]>} : vector<2x8x8xf32>, vector<2x8x8xf32>, vector<2x8x8xf32> -> vector<2x8x8xf32>
    "tpu.trace_stop"() : () -> ()
    %cst_78 = arith.constant 0.353553385 : f32
    %201 = vector.broadcast %cst_78 : f32 to vector<2x8x8xf32>
    %202 = arith.mulf %200, %201 : vector<2x8x8xf32>
    %cst_79 = arith.constant dense<0xFF800000> : vector<2x8xf32>
    %203 = vector.multi_reduction <maximumf>, %202, %cst_79 [2] : vector<2x8x8xf32> to vector<2x8xf32>
    %204 = vector.shape_cast %203 : vector<2x8xf32> to vector<2x8x1xf32>
    %205 = vector.broadcast %204 : vector<2x8x1xf32> to vector<2x8x8xf32>
    %206 = arith.subf %202, %205 : vector<2x8x8xf32>
    %207 = math.exp %206 : vector<2x8x8xf32>
    %cst_80 = arith.constant dense<0.000000e+00> : vector<2x8xf32>
    %208 = vector.multi_reduction <add>, %207, %cst_80 [2] : vector<2x8x8xf32> to vector<2x8xf32>
    %209 = vector.shape_cast %208 : vector<2x8xf32> to vector<2x8x1xf32>
    %210 = tpu.reciprocal %209 {approx = true} : vector<2x8x1xf32> -> vector<2x8x1xf32>
    %211 = vector.broadcast %210 : vector<2x8x1xf32> to vector<2x8x8xf32>
    %212 = arith.mulf %207, %211 : vector<2x8x8xf32>
    "tpu.trace_start"() <{level = 10 : i32, message = "bqk,bkd->bqd"}> : () -> ()
    %cst_81 = arith.constant dense<0.000000e+00> : vector<2x8x8xf32>
    %213 = tpu.matmul %212, %199, %cst_81 {dimension_numbers = #tpu.dot_dimension_numbers<[2], [1], [1], [2], [0, 0, 0, 1, 1, 2], [0], [0]>} : vector<2x8x8xf32>, vector<2x8x8xf32>, vector<2x8x8xf32> -> vector<2x8x8xf32>
    "tpu.trace_stop"() : () -> ()
    %214 = vector.shape_cast %213 : vector<2x8x8xf32> to vector<16x8xf32>
    %215 = vector.extract_strided_slice %163 {offsets = [8, 0], sizes = [8, 32], strides = [1, 1]} : vector<32x32xf32> to vector<8x32xf32>
    %cst_82 = arith.constant dense<0.000000e+00> : vector<16x32xf32>
    %216 = tpu.matmul %214, %215, %cst_82 {dimension_numbers = #tpu.dot_dimension_numbers<[1], [0], [0], [1], [0, 0, 1, 1], [], []>} : vector<16x8xf32>, vector<8x32xf32>, vector<16x32xf32> -> vector<16x32xf32>
    %217 = arith.addf %196, %216 : vector<16x32xf32>
    %218 = vector.extract_strided_slice %170 {offsets = [0, 0, 16], sizes = [2, 8, 8], strides = [1, 1, 1]} : vector<2x8x32xf32> to vector<2x8x8xf32>
    %219 = vector.extract_strided_slice %172 {offsets = [0, 0, 16], sizes = [2, 8, 8], strides = [1, 1, 1]} : vector<2x8x32xf32> to vector<2x8x8xf32>
    %220 = vector.extract_strided_slice %174 {offsets = [0, 0, 16], sizes = [2, 8, 8], strides = [1, 1, 1]} : vector<2x8x32xf32> to vector<2x8x8xf32>
    "tpu.trace_start"() <{level = 10 : i32, message = "bqd,bkd->bqk"}> : () -> ()
    %cst_83 = arith.constant dense<0.000000e+00> : vector<2x8x8xf32>
    %221 = tpu.matmul %218, %219, %cst_83 {dimension_numbers = #tpu.dot_dimension_numbers<[2], [2], [1], [1], [0, 0, 0, 1, 1, 1], [0], [0]>} : vector<2x8x8xf32>, vector<2x8x8xf32>, vector<2x8x8xf32> -> vector<2x8x8xf32>
    "tpu.trace_stop"() : () -> ()
    %cst_84 = arith.constant 0.353553385 : f32
    %222 = vector.broadcast %cst_84 : f32 to vector<2x8x8xf32>
    %223 = arith.mulf %221, %222 : vector<2x8x8xf32>
    %cst_85 = arith.constant dense<0xFF800000> : vector<2x8xf32>
    %224 = vector.multi_reduction <maximumf>, %223, %cst_85 [2] : vector<2x8x8xf32> to vector<2x8xf32>
    %225 = vector.shape_cast %224 : vector<2x8xf32> to vector<2x8x1xf32>
    %226 = vector.broadcast %225 : vector<2x8x1xf32> to vector<2x8x8xf32>
    %227 = arith.subf %223, %226 : vector<2x8x8xf32>
    %228 = math.exp %227 : vector<2x8x8xf32>
    %cst_86 = arith.constant dense<0.000000e+00> : vector<2x8xf32>
    %229 = vector.multi_reduction <add>, %228, %cst_86 [2] : vector<2x8x8xf32> to vector<2x8xf32>
    %230 = vector.shape_cast %229 : vector<2x8xf32> to vector<2x8x1xf32>
    %231 = tpu.reciprocal %230 {approx = true} : vector<2x8x1xf32> -> vector<2x8x1xf32>
    %232 = vector.broadcast %231 : vector<2x8x1xf32> to vector<2x8x8xf32>
    %233 = arith.mulf %228, %232 : vector<2x8x8xf32>
    "tpu.trace_start"() <{level = 10 : i32, message = "bqk,bkd->bqd"}> : () -> ()
    %cst_87 = arith.constant dense<0.000000e+00> : vector<2x8x8xf32>
    %234 = tpu.matmul %233, %220, %cst_87 {dimension_numbers = #tpu.dot_dimension_numbers<[2], [1], [1], [2], [0, 0, 0, 1, 1, 2], [0], [0]>} : vector<2x8x8xf32>, vector<2x8x8xf32>, vector<2x8x8xf32> -> vector<2x8x8xf32>
    "tpu.trace_stop"() : () -> ()
    %235 = vector.shape_cast %234 : vector<2x8x8xf32> to vector<16x8xf32>
    %236 = vector.extract_strided_slice %163 {offsets = [16, 0], sizes = [8, 32], strides = [1, 1]} : vector<32x32xf32> to vector<8x32xf32>
    %cst_88 = arith.constant dense<0.000000e+00> : vector<16x32xf32>
    %237 = tpu.matmul %235, %236, %cst_88 {dimension_numbers = #tpu.dot_dimension_numbers<[1], [0], [0], [1], [0, 0, 1, 1], [], []>} : vector<16x8xf32>, vector<8x32xf32>, vector<16x32xf32> -> vector<16x32xf32>
    %238 = arith.addf %217, %237 : vector<16x32xf32>
    %239 = vector.extract_strided_slice %170 {offsets = [0, 0, 24], sizes = [2, 8, 8], strides = [1, 1, 1]} : vector<2x8x32xf32> to vector<2x8x8xf32>
    %240 = vector.extract_strided_slice %172 {offsets = [0, 0, 24], sizes = [2, 8, 8], strides = [1, 1, 1]} : vector<2x8x32xf32> to vector<2x8x8xf32>
    %241 = vector.extract_strided_slice %174 {offsets = [0, 0, 24], sizes = [2, 8, 8], strides = [1, 1, 1]} : vector<2x8x32xf32> to vector<2x8x8xf32>
    "tpu.trace_start"() <{level = 10 : i32, message = "bqd,bkd->bqk"}> : () -> ()
    %cst_89 = arith.constant dense<0.000000e+00> : vector<2x8x8xf32>
    %242 = tpu.matmul %239, %240, %cst_89 {dimension_numbers = #tpu.dot_dimension_numbers<[2], [2], [1], [1], [0, 0, 0, 1, 1, 1], [0], [0]>} : vector<2x8x8xf32>, vector<2x8x8xf32>, vector<2x8x8xf32> -> vector<2x8x8xf32>
    "tpu.trace_stop"() : () -> ()
    %cst_90 = arith.constant 0.353553385 : f32
    %243 = vector.broadcast %cst_90 : f32 to vector<2x8x8xf32>
    %244 = arith.mulf %242, %243 : vector<2x8x8xf32>
    %cst_91 = arith.constant dense<0xFF800000> : vector<2x8xf32>
    %245 = vector.multi_reduction <maximumf>, %244, %cst_91 [2] : vector<2x8x8xf32> to vector<2x8xf32>
    %246 = vector.shape_cast %245 : vector<2x8xf32> to vector<2x8x1xf32>
    %247 = vector.broadcast %246 : vector<2x8x1xf32> to vector<2x8x8xf32>
    %248 = arith.subf %244, %247 : vector<2x8x8xf32>
    %249 = math.exp %248 : vector<2x8x8xf32>
    %cst_92 = arith.constant dense<0.000000e+00> : vector<2x8xf32>
    %250 = vector.multi_reduction <add>, %249, %cst_92 [2] : vector<2x8x8xf32> to vector<2x8xf32>
    %251 = vector.shape_cast %250 : vector<2x8xf32> to vector<2x8x1xf32>
    %252 = tpu.reciprocal %251 {approx = true} : vector<2x8x1xf32> -> vector<2x8x1xf32>
    %253 = vector.broadcast %252 : vector<2x8x1xf32> to vector<2x8x8xf32>
    %254 = arith.mulf %249, %253 : vector<2x8x8xf32>
    "tpu.trace_start"() <{level = 10 : i32, message = "bqk,bkd->bqd"}> : () -> ()
    %cst_93 = arith.constant dense<0.000000e+00> : vector<2x8x8xf32>
    %255 = tpu.matmul %254, %241, %cst_93 {dimension_numbers = #tpu.dot_dimension_numbers<[2], [1], [1], [2], [0, 0, 0, 1, 1, 2], [0], [0]>} : vector<2x8x8xf32>, vector<2x8x8xf32>, vector<2x8x8xf32> -> vector<2x8x8xf32>
    "tpu.trace_stop"() : () -> ()
    %256 = vector.shape_cast %255 : vector<2x8x8xf32> to vector<16x8xf32>
    %257 = vector.extract_strided_slice %163 {offsets = [24, 0], sizes = [8, 32], strides = [1, 1]} : vector<32x32xf32> to vector<8x32xf32>
    %cst_94 = arith.constant dense<0.000000e+00> : vector<16x32xf32>
    %258 = tpu.matmul %256, %257, %cst_94 {dimension_numbers = #tpu.dot_dimension_numbers<[1], [0], [0], [1], [0, 0, 1, 1], [], []>} : vector<16x8xf32>, vector<8x32xf32>, vector<16x32xf32> -> vector<16x32xf32>
    %259 = arith.addf %238, %258 : vector<16x32xf32>
    %c0_95 = arith.constant 0 : index
    %c0_96 = arith.constant 0 : index
    %260 = vector.load %arg16[%c0_95, %c0_96] : memref<1x32xf32, #tpu.memory_space<vmem>>, vector<1x32xf32>
    %261 = vector.broadcast %260 : vector<1x32xf32> to vector<16x32xf32>
    %262 = arith.addf %259, %261 : vector<16x32xf32>
    %263 = arith.addf %162, %262 : vector<16x32xf32>
    %c0_97 = arith.constant 0 : index
    %c0_98 = arith.constant 0 : index
    %264 = vector.load %arg21[%c0_97, %c0_98] : memref<1x32xf32, #tpu.memory_space<vmem>>, vector<1x32xf32>
    %c0_99 = arith.constant 0 : index
    %c0_100 = arith.constant 0 : index
    %265 = vector.load %arg22[%c0_99, %c0_100] : memref<1x32xf32, #tpu.memory_space<vmem>>, vector<1x32xf32>
    %cst_101 = arith.constant dense<0.000000e+00> : vector<16xf32>
    %266 = vector.multi_reduction <add>, %263, %cst_101 [1] : vector<16x32xf32> to vector<16xf32>
    %267 = vector.shape_cast %266 : vector<16xf32> to vector<16x1xf32>
    %cst_102 = arith.constant 3.200000e+01 : f32
    %268 = vector.broadcast %cst_102 : f32 to vector<16x1xf32>
    %269 = arith.divf %267, %268 : vector<16x1xf32>
    %270 = vector.broadcast %269 : vector<16x1xf32> to vector<16x32xf32>
    %271 = arith.subf %263, %270 : vector<16x32xf32>
    %272 = arith.mulf %271, %271 : vector<16x32xf32>
    %cst_103 = arith.constant dense<0.000000e+00> : vector<16xf32>
    %273 = vector.multi_reduction <add>, %272, %cst_103 [1] : vector<16x32xf32> to vector<16xf32>
    %274 = vector.shape_cast %273 : vector<16xf32> to vector<16x1xf32>
    %cst_104 = arith.constant 3.200000e+01 : f32
    %275 = vector.broadcast %cst_104 : f32 to vector<16x1xf32>
    %276 = arith.divf %274, %275 : vector<16x1xf32>
    %277 = vector.broadcast %269 : vector<16x1xf32> to vector<16x32xf32>
    %278 = arith.subf %263, %277 : vector<16x32xf32>
    %cst_105 = arith.constant 9.99999974E-6 : f32
    %279 = vector.broadcast %cst_105 : f32 to vector<16x1xf32>
    %280 = arith.addf %276, %279 : vector<16x1xf32>
    %281 = math.rsqrt %280 : vector<16x1xf32>
    %282 = vector.broadcast %281 : vector<16x1xf32> to vector<16x32xf32>
    %283 = arith.mulf %278, %282 : vector<16x32xf32>
    %284 = vector.broadcast %264 : vector<1x32xf32> to vector<16x32xf32>
    %285 = arith.mulf %283, %284 : vector<16x32xf32>
    %286 = vector.broadcast %265 : vector<1x32xf32> to vector<16x32xf32>
    %287 = arith.addf %285, %286 : vector<16x32xf32>
    %c0_106 = arith.constant 0 : index
    %c0_107 = arith.constant 0 : index
    %288 = vector.load %arg17[%c0_106, %c0_107] : memref<32x32xf32, #tpu.memory_space<vmem>>, vector<32x32xf32>
    %cst_108 = arith.constant dense<0.000000e+00> : vector<16x32xf32>
    %289 = tpu.matmul %287, %288, %cst_108 {dimension_numbers = #tpu.dot_dimension_numbers<[1], [0], [0], [1], [0, 0, 1, 1], [], []>} : vector<16x32xf32>, vector<32x32xf32>, vector<16x32xf32> -> vector<16x32xf32>
    %c0_109 = arith.constant 0 : index
    %c0_110 = arith.constant 0 : index
    %290 = vector.load %arg18[%c0_109, %c0_110] : memref<1x32xf32, #tpu.memory_space<vmem>>, vector<1x32xf32>
    %291 = vector.broadcast %290 : vector<1x32xf32> to vector<16x32xf32>
    %292 = arith.addf %289, %291 : vector<16x32xf32>
    %cst_111 = arith.constant 0.000000e+00 : f32
    %293 = vector.broadcast %cst_111 : f32 to vector<16x32xf32>
    %294 = arith.maximumf %292, %293 : vector<16x32xf32>
    %c0_112 = arith.constant 0 : index
    %c0_113 = arith.constant 0 : index
    %295 = vector.load %arg19[%c0_112, %c0_113] : memref<32x32xf32, #tpu.memory_space<vmem>>, vector<32x32xf32>
    %cst_114 = arith.constant dense<0.000000e+00> : vector<16x32xf32>
    %296 = tpu.matmul %294, %295, %cst_114 {dimension_numbers = #tpu.dot_dimension_numbers<[1], [0], [0], [1], [0, 0, 1, 1], [], []>} : vector<16x32xf32>, vector<32x32xf32>, vector<16x32xf32> -> vector<16x32xf32>
    %c0_115 = arith.constant 0 : index
    %c0_116 = arith.constant 0 : index
    %297 = vector.load %arg20[%c0_115, %c0_116] : memref<1x32xf32, #tpu.memory_space<vmem>>, vector<1x32xf32>
    %298 = vector.broadcast %297 : vector<1x32xf32> to vector<16x32xf32>
    %299 = arith.addf %296, %298 : vector<16x32xf32>
    %300 = arith.addf %287, %299 : vector<16x32xf32>
    %c0_117 = arith.constant 0 : index
    %c0_118 = arith.constant 0 : index
    %301 = vector.load %arg23[%c0_117, %c0_118] : memref<1x32xf32, #tpu.memory_space<vmem>>, vector<1x32xf32>
    %c0_119 = arith.constant 0 : index
    %c0_120 = arith.constant 0 : index
    %302 = vector.load %arg24[%c0_119, %c0_120] : memref<1x32xf32, #tpu.memory_space<vmem>>, vector<1x32xf32>
    %cst_121 = arith.constant dense<0.000000e+00> : vector<16xf32>
    %303 = vector.multi_reduction <add>, %300, %cst_121 [1] : vector<16x32xf32> to vector<16xf32>
    %304 = vector.shape_cast %303 : vector<16xf32> to vector<16x1xf32>
    %cst_122 = arith.constant 3.200000e+01 : f32
    %305 = vector.broadcast %cst_122 : f32 to vector<16x1xf32>
    %306 = arith.divf %304, %305 : vector<16x1xf32>
    %307 = vector.broadcast %306 : vector<16x1xf32> to vector<16x32xf32>
    %308 = arith.subf %300, %307 : vector<16x32xf32>
    %309 = arith.mulf %308, %308 : vector<16x32xf32>
    %cst_123 = arith.constant dense<0.000000e+00> : vector<16xf32>
    %310 = vector.multi_reduction <add>, %309, %cst_123 [1] : vector<16x32xf32> to vector<16xf32>
    %311 = vector.shape_cast %310 : vector<16xf32> to vector<16x1xf32>
    %cst_124 = arith.constant 3.200000e+01 : f32
    %312 = vector.broadcast %cst_124 : f32 to vector<16x1xf32>
    %313 = arith.divf %311, %312 : vector<16x1xf32>
    %314 = vector.broadcast %306 : vector<16x1xf32> to vector<16x32xf32>
    %315 = arith.subf %300, %314 : vector<16x32xf32>
    %cst_125 = arith.constant 9.99999974E-6 : f32
    %316 = vector.broadcast %cst_125 : f32 to vector<16x1xf32>
    %317 = arith.addf %313, %316 : vector<16x1xf32>
    %318 = math.rsqrt %317 : vector<16x1xf32>
    %319 = vector.broadcast %318 : vector<16x1xf32> to vector<16x32xf32>
    %320 = arith.mulf %315, %319 : vector<16x32xf32>
    %321 = vector.broadcast %301 : vector<1x32xf32> to vector<16x32xf32>
    %322 = arith.mulf %320, %321 : vector<16x32xf32>
    %323 = vector.broadcast %302 : vector<1x32xf32> to vector<16x32xf32>
    %324 = arith.addf %322, %323 : vector<16x32xf32>
    %325 = vector.shape_cast %324 : vector<16x32xf32> to vector<2x8x32xf32>
    %cst_126 = arith.constant dense<0.000000e+00> : vector<2x32xf32>
    %326 = vector.multi_reduction <add>, %325, %cst_126 [1] : vector<2x8x32xf32> to vector<2x32xf32>
    %cst_127 = arith.constant 1.250000e-01 : f32
    %327 = vector.broadcast %cst_127 : f32 to vector<2x32xf32>
    %328 = arith.mulf %326, %327 : vector<2x32xf32>
    %c0_128 = arith.constant 0 : index
    %c0_129 = arith.constant 0 : index
    %329 = vector.load %arg25[%c0_128, %c0_129] : memref<32x8xf32, #tpu.memory_space<vmem>>, vector<32x8xf32>
    %cst_130 = arith.constant dense<0.000000e+00> : vector<2x8xf32>
    %330 = tpu.matmul %328, %329, %cst_130 {dimension_numbers = #tpu.dot_dimension_numbers<[1], [0], [0], [1], [0, 0, 1, 1], [], []>} : vector<2x32xf32>, vector<32x8xf32>, vector<2x8xf32> -> vector<2x8xf32>
    %c0_131 = arith.constant 0 : index
    %c0_132 = arith.constant 0 : index
    %331 = vector.load %arg26[%c0_131, %c0_132] : memref<1x8xf32, #tpu.memory_space<vmem>>, vector<1x8xf32>
    %332 = vector.broadcast %331 : vector<1x8xf32> to vector<2x8xf32>
    %333 = arith.addf %330, %332 : vector<2x8xf32>
    %c0_133 = arith.constant 0 : index
    %c0_134 = arith.constant 0 : index
    %334 = vector.load %arg27[%c0_133, %c0_134] : memref<2x8xf32, #tpu.memory_space<vmem>>, vector<2x8xf32>
    tpu.vector_store %arg27[%c0_133, %c0_134], %333 {strides = array<i32>} : memref<2x8xf32, #tpu.memory_space<vmem>>, vector<2x8xf32>,
    return
  }
}

</mosaic_0001>

<bundles_post_ra>
// kernel: _lambda_.1
= control target key start
LH: loop header
LB: loop body
LE: loop exit
PB: predicated region body
PF: predicated region fallthrough
CT: control target
= control target key end

     0   :  { %s6003_s0 = inlined_call_operand.vmem [shape: f32[16,32], index: 0, kind: input, shape index: {}]   ;;  %s6004_s1 = inlined_call_operand.hbm [shape: f32[32,96], index: 1, kind: input, shape index: {}]   ;;  %s6005_s2 = inlined_call_operand.hbm [shape: f32[1,96], index: 2, kind: input, shape index: {}]   ;;  %s6006_s3 = inlined_call_operand.hbm [shape: f32[32,32], index: 3, kind: input, shape index: {}]   ;;  %s6007_s4 = inlined_call_operand.vmem [shape: f32[1,32], index: 4, kind: input, shape index: {}, may-alias: {4,8,10,12,16,20,22,24}]   ;;  %s6008_s5 = inlined_call_operand.hbm [shape: f32[32,32], index: 5, kind: input, shape index: {}]   ;;  %s6009_s6 = inlined_call_operand.vmem [shape: f32[1,32], index: 6, kind: input, shape index: {}]   ;;  %s6010_s7 = inlined_call_operand.hbm [shape: f32[32,32], index: 7, kind: input, shape index: {}]   ;;  %s6011_s8 = inlined_call_operand.vmem [shape: f32[1,32], index: 8, kind: input, shape index: {}, may-alias: {4,8,10,12,16,20,22,24}]   ;;  %s6012_s9 = inlined_call_operand.vmem [shape: f32[1,32], index: 9, kind: input, shape index: {}, may-alias: {9,11,21,23}]   ;;  %s6013_s10 = inlined_call_operand.vmem [shape: f32[1,32], index: 10, kind: input, shape index: {}, may-alias: {4,8,10,12,16,20,22,24}]   ;;  %s6014_s11 = inlined_call_operand.vmem [shape: f32[1,32], index: 11, kind: input, shape index: {}, may-alias: {9,11,21,23}]   ;;  %s6015_s12 = inlined_call_operand.vmem [shape: f32[1,32], index: 12, kind: input, shape index: {}, may-alias: {4,8,10,12,16,20,22,24}]   ;;  %s6016_s13 = inlined_call_operand.hbm [shape: f32[32,96], index: 13, kind: input, shape index: {}]   ;;  %s6017_s14 = inlined_call_operand.vmem [shape: f32[1,96], index: 14, kind: input, shape index: {}]   ;;  %s6018_s15 = inlined_call_operand.hbm [shape: f32[32,32], index: 15, kind: input, shape index: {}]   ;;  %s6019_s16 = inlined_call_operand.vmem [shape: f32[1,32], index: 16, kind: input, shape index: {}, may-alias: {4,8,10,12,16,20,22,24}]   ;;  %s6020_s17 = inlined_call_operand.hbm [shape: f32[32,32], index: 17, kind: input, shape index: {}]   ;;  %s6021_s18 = inlined_call_operand.vmem [shape: f32[1,32], index: 18, kind: input, shape index: {}]   ;;  %s6022_s19 = inlined_call_operand.vmem [shape: f32[32,32], index: 19, kind: input, shape index: {}]   ;;  %s6023_s20 = inlined_call_operand.vmem [shape: f32[1,32], index: 20, kind: input, shape index: {}, may-alias: {4,8,10,12,16,20,22,24}]   ;;  %s6024_s21 = inlined_call_operand.vmem [shape: f32[1,32], index: 21, kind: input, shape index: {}, may-alias: {9,11,21,23}]   ;;  %s6025_s22 = inlined_call_operand.vmem [shape: f32[1,32], index: 22, kind: input, shape index: {}, may-alias: {4,8,10,12,16,20,22,24}]   ;;  %s6026_s23 = inlined_call_operand.vmem [shape: f32[1,32], index: 23, kind: input, shape index: {}, may-alias: {9,11,21,23}]   ;;  %s6027_s24 = inlined_call_operand.vmem [shape: f32[1,32], index: 24, kind: input, shape index: {}, may-alias: {4,8,10,12,16,20,22,24}]   ;;  %s6028_s25 = inlined_call_operand.vmem [shape: f32[32,8], index: 25, kind: input, shape index: {}]   ;;  %s6029_s26 = inlined_call_operand.vmem [shape: f32[1,8], index: 26, kind: input, shape index: {}]   ;;  %s6030_s27 = inlined_call_operand.hbm [shape: f32[2,8], index: 27, kind: output, shape index: {}]  }
   0x1   :  { %6038 = sst [smem:[#allocation23_spill]] %s6003_s0 }
   0x2   :  { %6039 = sst [smem:[#allocation24_spill]] %s6004_s1 }
   0x3   :  { %6040 = sst [smem:[#allocation25_spill]] %s6005_s2 }
   0x4   :  { %6041 = sst [smem:[#allocation26_spill]] %s6006_s3 }
   0x5   :  { %6042 = sst [smem:[#allocation27_spill]] %s6007_s4 }
   0x6   :  { %6043 = sst [smem:[#allocation28_spill]] %s6008_s5 }
   0x7   :  { %6044 = sst [smem:[#allocation29_spill]] %s6009_s6 }
   0x8   :  { %6045 = sst [smem:[#allocation30_spill]] %s6010_s7 }
   0x9   :  { %6046 = sst [smem:[#allocation31_spill]] %s6011_s8 }
   0xa   :  { %6047 = sst [smem:[#allocation32_spill]] %s6012_s9 }
   0xb   :  { %6048 = sst [smem:[#allocation33_spill]] %s6013_s10 }
   0xc   :  { %6049 = sst [smem:[#allocation34_spill]] %s6014_s11 }
   0xd   :  { %6050 = sst [smem:[#allocation35_spill]] %s6029_s26 }
   0xe   :  { %6051 = sst [smem:[#allocation36_spill]] %s6030_s27 }
   0xf   :  { %32 = vsyncpa [#allocation3], 0 }
  0x10   :  { %33 = vsyncpa [#allocation6], 0 }
  0x11   :  { %34 = vsyncpa [#allocation9], 0 }
  0x12   :  { %35 = vsyncpa [#allocation12], 0 }
  0x13   :  { %36 = vsyncpa [#allocation15], 0 }
  0x14   :  { %37 = vsyncpa [#allocation4], 0  ;;  %s5278_s7 = smov [#allocation5]   ;;  %s6052_s9 = sld [smem:[#allocation25_spill]] }
  0x15   :  { %s58_s4 = sshll.u32 %s5278_s7, 4  ;;  %s59_s4 = int_to_ptr.vmem [resolvable:$true] %s58_s4 }
  0x1a   :  { %s5068_s5 = scalar_lea.hbm %s6052_s9, 16 }
  0x1b   :  { %p5069_p0 = scmp.ne.s32.totalorder %s6052_s9, %s5068_s5  ;;  %p5072_p1 = scmp.lt.u32.totalorder %s5068_s5, %s6052_s9 }
  0x1d   :  { %p5074_p2 = pnand %p5072_p1, %p5069_p0 }
  0x1f   :  { %5077 = shalt.err (!%p5074_p2)
}
  0x20   :  { %s5078_s1 = scalar_lea.vmem %s59_s4, 16  ;;  %s5082_s6 = scalar_lea.vmem %s59_s4, 32 }
  0x21   :  { %p5079_p3 = scmp.ne.s32.totalorder %s59_s4, %s5078_s1  ;;  %p5083_p4 = scmp.lt.s32.totalorder %s59_s4, %s59_s4 }
  0x22   :  { %p5084_p5 = scmp.lt.s32.totalorder %s5082_s6, %s5078_s1 }
  0x24   :  { %p5085_p6 = por %p5084_p5, %p5083_p4 }
  0x26   :  { %p5086_p7 = pnand %p5085_p6, %p5079_p3 }
  0x28   :  { %5089 = shalt.err (!%p5086_p7)
}
  0x29   :  { %61 = dma.hbm_to_vmem [thread:$0]  %s6052_s9, 16, %s59_s4, [#allocation6]  }
  0x2a   :  { %s5279_s3 = smov [#allocation8]   ;;  %s5280_s8 = smov [#allocation11]  }
  0x2b   :  { %s81_s7 = sshll.u32 %s5279_s3, 4  ;;  %s117_s30 = sshll.u32 %s5280_s8, 4  ;;  %s82_s7 = int_to_ptr.vmem [resolvable:$true] %s81_s7  ;;  %s118_s30 = int_to_ptr.vmem [resolvable:$true] %s117_s30 }
  0x2c   :  { %s6053_s0 = sld [smem:[#allocation28_spill]] }
  0x32   :  { %s5090_s10 = scalar_lea.hbm %s6053_s0, 512 }
  0x33   :  { %p5091_p8 = scmp.ne.s32.totalorder %s6053_s0, %s5090_s10  ;;  %p5094_p9 = scmp.lt.u32.totalorder %s5090_s10, %s6053_s0 }
  0x35   :  { %p5096_p10 = pnand %p5094_p9, %p5091_p8 }
  0x37   :  { %5099 = shalt.err (!%p5096_p10)
}
  0x38   :  { %s5100_s4 = scalar_lea.vmem %s82_s7, 512  ;;  %p5105_p12 = scmp.lt.s32.totalorder %s82_s7, %s82_s7 }
  0x39   :  { %p5101_p11 = scmp.ne.s32.totalorder %s82_s7, %s5100_s4  ;;  %p5106_p13 = scmp.lt.s32.totalorder %s5100_s4, %s5100_s4 }
  0x3b   :  { %p5107_p0 = por %p5106_p13, %p5105_p12 }
  0x3d   :  { %p5108_p1 = pnand %p5107_p0, %p5101_p11 }
  0x3f   :  { %5111 = shalt.err (!%p5108_p1)
}
  0x40   :  { %s5281_s9 = smov 128   ;;  %s5282_s11 = smov 8  }
  0x41   :  { %87 = dma.hbm_to_vmem [thread:$0]  %s6053_s0, 512, %s82_s7, [#allocation9], %s5281_s9, %s5281_s9, %s5282_s11  }
  0x42   :  { %s5112_s5 = scalar_lea.hbm %s6016_s13, 512 }
  0x43   :  { %p5113_p2 = scmp.ne.s32.totalorder %s6016_s13, %s5112_s5  ;;  %p5116_p3 = scmp.lt.u32.totalorder %s5112_s5, %s6016_s13 }
  0x45   :  { %p5118_p4 = pnand %p5116_p3, %p5113_p2 }
  0x47   :  { %5121 = shalt.err (!%p5118_p4)
}
  0x48   :  { %s5122_s6 = scalar_lea.vmem %s118_s30, 512  ;;  %p5127_p6 = scmp.lt.s32.totalorder %s118_s30, %s118_s30 }
  0x49   :  { %p5123_p5 = scmp.ne.s32.totalorder %s118_s30, %s5122_s6  ;;  %p5128_p7 = scmp.lt.s32.totalorder %s5122_s6, %s5122_s6 }
  0x4b   :  { %p5129_p8 = por %p5128_p7, %p5127_p6 }
  0x4d   :  { %p5130_p9 = pnand %p5129_p8, %p5123_p5 }
  0x4f   :  { %5133 = shalt.err (!%p5130_p9)
}
  0x50   :  { %123 = dma.hbm_to_vmem [thread:$0]  %s6016_s13, 512, %s118_s30, [#allocation12], %s5281_s9, %s5281_s9, %s5282_s11  }
  0x51   :  { %s5283_s4 = smov [#allocation2]   ;;  %s5284_s2 = smov [#allocation7]  }
  0x52   :  { %s45_s27 = sshll.u32 %s5283_s4, 4  ;;  %s67_s3 = sshll.u32 %s5284_s2, 4  ;;  %s46_s27 = int_to_ptr.vmem [resolvable:$true] %s45_s27  ;;  %s68_s3 = int_to_ptr.vmem [resolvable:$true] %s67_s3 }
  0x53   :  { %s6054_s28 = sld [smem:[#allocation24_spill]] }
  0x59   :  { %s5134_s10 = scalar_lea.hbm %s6054_s28, 512 }
  0x5a   :  { %p5135_p10 = scmp.ne.s32.totalorder %s6054_s28, %s5134_s10  ;;  %p5138_p11 = scmp.lt.u32.totalorder %s5134_s10, %s6054_s28 }
  0x5c   :  { %p5140_p12 = pnand %p5138_p11, %p5135_p10 }
  0x5e   :  { %5143 = shalt.err (!%p5140_p12)
}
  0x5f   :  { %s5144_s13 = scalar_lea.vmem %s46_s27, 512  ;;  %p5149_p0 = scmp.lt.s32.totalorder %s46_s27, %s46_s27 }
  0x60   :  { %p5145_p13 = scmp.ne.s32.totalorder %s46_s27, %s5144_s13  ;;  %p5150_p1 = scmp.lt.s32.totalorder %s5144_s13, %s5144_s13 }
  0x62   :  { %p5151_p2 = por %p5150_p1, %p5149_p0 }
  0x64   :  { %p5152_p3 = pnand %p5151_p2, %p5145_p13 }
  0x66   :  { %5155 = shalt.err (!%p5152_p3)
}
  0x67   :  { %51 = dma.hbm_to_vmem [thread:$0]  %s6054_s28, 512, %s46_s27, [#allocation3], %s5281_s9, %s5281_s9, %s5282_s11  }
  0x68   :  { %s6055_s4 = sld [smem:[#allocation26_spill]] }
  0x6e   :  { %s5156_s2 = scalar_lea.hbm %s6055_s4, 512 }
  0x6f   :  { %p5157_p4 = scmp.ne.s32.totalorder %s6055_s4, %s5156_s2  ;;  %p5160_p5 = scmp.lt.u32.totalorder %s5156_s2, %s6055_s4 }
  0x71   :  { %p5162_p6 = pnand %p5160_p5, %p5157_p4 }
  0x73   :  { %5165 = shalt.err (!%p5162_p6)
}
  0x74   :  { %s5166_s1 = scalar_lea.vmem %s68_s3, 512  ;;  %p5171_p8 = scmp.lt.s32.totalorder %s68_s3, %s68_s3 }
  0x75   :  { %p5167_p7 = scmp.ne.s32.totalorder %s68_s3, %s5166_s1  ;;  %p5172_p9 = scmp.lt.s32.totalorder %s5166_s1, %s5166_s1 }
  0x77   :  { %p5173_p10 = por %p5172_p9, %p5171_p8 }
  0x79   :  { %p5174_p11 = pnand %p5173_p10, %p5167_p7 }
  0x7b   :  { %5177 = shalt.err (!%p5174_p11)
}
  0x7c   :  { %73 = dma.hbm_to_vmem [thread:$0]  %s6055_s4, 512, %s68_s3, [#allocation6], %s5281_s9, %s5281_s9, %s5282_s11  }
  0x7d   :  { %s5285_s6 = smov [#allocation10]   ;;  %s5286_s30 = smov [#allocation13]  }
  0x7e   :  { %s95_s13 = sshll.u32 %s5285_s6, 4  ;;  %s131_s7 = sshll.u32 %s5286_s30, 4  ;;  %s96_s13 = int_to_ptr.vmem [resolvable:$true] %s95_s13  ;;  %s132_s7 = int_to_ptr.vmem [resolvable:$true] %s131_s7 }
  0x7f   :  { %s6056_s2 = sld [smem:[#allocation30_spill]] }
  0x85   :  { %s5178_s8 = scalar_lea.hbm %s6056_s2, 512 }
  0x86   :  { %p5179_p12 = scmp.ne.s32.totalorder %s6056_s2, %s5178_s8  ;;  %p5182_p13 = scmp.lt.u32.totalorder %s5178_s8, %s6056_s2 }
  0x88   :  { %p5184_p0 = pnand %p5182_p13, %p5179_p12 }
  0x8a   :  { %5187 = shalt.err (!%p5184_p0)
}
  0x8b   :  { %s5188_s3 = scalar_lea.vmem %s96_s13, 512  ;;  %p5193_p2 = scmp.lt.s32.totalorder %s96_s13, %s96_s13 }
  0x8c   :  { %p5189_p1 = scmp.ne.s32.totalorder %s96_s13, %s5188_s3  ;;  %p5194_p3 = scmp.lt.s32.totalorder %s5188_s3, %s5188_s3 }
  0x8e   :  { %p5195_p4 = por %p5194_p3, %p5193_p2 }
  0x90   :  { %p5196_p5 = pnand %p5195_p4, %p5189_p1 }
  0x92   :  { %5199 = shalt.err (!%p5196_p5)
}
  0x93   :  { %101 = dma.hbm_to_vmem [thread:$0]  %s6056_s2, 512, %s96_s13, [#allocation9], %s5281_s9, %s5281_s9, %s5282_s11  }
  0x94   :  { %s5200_s30 = scalar_lea.hbm %s6018_s15, 512 }
  0x95   :  { %p5201_p6 = scmp.ne.s32.totalorder %s6018_s15, %s5200_s30  ;;  %p5204_p7 = scmp.lt.u32.totalorder %s5200_s30, %s6018_s15 }
  0x97   :  { %p5206_p8 = pnand %p5204_p7, %p5201_p6 }
  0x99   :  { %5209 = shalt.err (!%p5206_p8)
}
  0x9a   :  { %s5210_s10 = scalar_lea.vmem %s132_s7, 512  ;;  %p5215_p10 = scmp.lt.s32.totalorder %s132_s7, %s132_s7 }
  0x9b   :  { %p5211_p9 = scmp.ne.s32.totalorder %s132_s7, %s5210_s10  ;;  %p5216_p11 = scmp.lt.s32.totalorder %s5210_s10, %s5210_s10 }
  0x9d   :  { %p5217_p12 = por %p5216_p11, %p5215_p10 }
  0x9f   :  { %p5218_p13 = pnand %p5217_p12, %p5211_p9 }
  0xa1   :  { %5221 = shalt.err (!%p5218_p13)
}
  0xa2   :  { %137 = dma.hbm_to_vmem [thread:$0]  %s6018_s15, 512, %s132_s7, [#allocation12], %s5281_s9, %s5281_s9, %s5282_s11  }
  0xa3   :  { %s5287_s29 = smov [#allocation14]   ;;  %s5222_s27 = scalar_lea.hbm %s6020_s17, 512 }
  0xa4   :  { %s145_s1 = sshll.u32 %s5287_s29, 4  ;;  %p5223_p0 = scmp.ne.s32.totalorder %s6020_s17, %s5222_s27  ;;  %s146_s1 = int_to_ptr.vmem [resolvable:$true] %s145_s1 }
  0xa5   :  { %p5226_p1 = scmp.lt.u32.totalorder %s5222_s27, %s6020_s17 }
  0xa7   :  { %p5228_p2 = pnand %p5226_p1, %p5223_p0 }
  0xa9   :  { %5231 = shalt.err (!%p5228_p2)
}
  0xaa   :  { %s5232_s26 = scalar_lea.vmem %s146_s1, 512  ;;  %p5237_p4 = scmp.lt.s32.totalorder %s146_s1, %s146_s1 }
  0xab   :  { %p5233_p3 = scmp.ne.s32.totalorder %s146_s1, %s5232_s26  ;;  %p5238_p5 = scmp.lt.s32.totalorder %s5232_s26, %s5232_s26 }
  0xad   :  { %p5239_p6 = por %p5238_p5, %p5237_p4 }
  0xaf   :  { %p5240_p7 = pnand %p5239_p6, %p5233_p3 }
  0xb1   :  { %5243 = shalt.err (!%p5240_p7)
}
  0xb2   :  { %151 = dma.hbm_to_vmem [thread:$0]  %s6020_s17, 512, %s146_s1, [#allocation15], %s5281_s9, %s5281_s9, %s5282_s11  }
  0xb3   :  { %5266 = dma.done.wait [#allocation3], 512  }
  0xb4   :  { %5267 = vsyncadd [#allocation3], 4294966784 }
  0xb5   :  { %5268 = dma.done.wait [#allocation6], 528  }
  0xb6   :  { %5269 = vsyncadd [#allocation6], 4294966768 }
  0xb7   :  { %5270 = dma.done.wait [#allocation9], 1024  }
  0xb8   :  { %5271 = vsyncadd [#allocation9], 4294966272 }
  0xb9   :  { %5272 = dma.done.wait [#allocation12], 1024  }
  0xba   :  { %5273 = vsyncadd [#allocation12], 4294966272 }
  0xbb   :  { %5274 = dma.done.wait [#allocation15], 512  }
  0xbc   :  { %5275 = vsyncadd [#allocation15], 4294966784  ;;  %vm211_vm0 = vcmask 261120   ;;  %v200_v0 = vld [vmem:[#allocation2] sm:$0xff]  ;;  %v201_v1 = vld [vmem:[#allocation2 + $0x8] sm:$0xff]  ;;  %s6057_s10 = sld [smem:[#allocation23_spill]] }
  0xbd   :  { %v202_v2 = vld [vmem:[#allocation2 + $0x10] sm:$0xff]  ;;  %v4897_v3 = vpack.c.bf16 %v201_v1, %v200_v0  ;;  %v203_v4 = vld [vmem:[#allocation2 + $0x18] sm:$0xff]  ;;  %v5288_v8 = vmov 0.0   ;;  %vm5289_vm1 = vmmov 0   ;;  %v4397_v9 = vld [vmem:[#allocation5] ss:$0 sm:$0xff] }
  0xbe   :  { %v4901_v6 = vpack.c.bf16 %v203_v4, %v202_v2  ;;  %4631 = vmatprep.subr.mxu1 %v5288_v8  ;;  %4633 = vmatprep.mubr.msk.f32.mxu1 %vm5289_vm1, %v5288_v8  ;;  %s5290_s11 = smov 96   ;;  %s5291_s13 = smov 64   ;;  %vm296_vm2 = vcmask 64512   ;;  %vm4302_vm3 = vcmask 1041409   ;;  %vm4376_vm4 = vcmask 58368  }
  0xbf   :  { %4898 = vmatprep.subr.bf16.mxu0 %v4897_v3  ;;  %s5292_s2 = smov 120   ;;  %s5293_s29 = smov 88  }
  0xc0   :  { %4900 = vmatpush3.bf16.msra.mxu0 %v4897_v3  ;;  %s5294_s1 = smov 80   ;;  %s5295_s3 = smov 56  }
  0xc1   :  { %4902 = vmatprep.subr.bf16.mxu0 %v4901_v6  ;;  %s5296_s4 = smov 112   ;;  %s5297_s27 = smov 48  }
  0xc2   :  { %v5563_v5 = vld [vmem:[%s6057_s10] sm:$0xff]  ;;  %v5570_v7 = vld [vmem:[%s6057_s10 + $0x8] sm:$0xff]  ;;  %s5298_s28 = smov 72   ;;  %s5299_s6 = smov 104  }
  0xc3   :  { %4628 = vmatprep.mubr.msk.f32.mxu0 %vm211_vm0, %v5563_v5  ;;  %s5300_s30 = smov 40   ;;  %s6058_s15 = sld [smem:[#allocation27_spill]] }
  0xc4   :  { %4904 = vmatpush3.bf16.msra.mxu0 %v4901_v6  ;;  %s6059_s5 = sld [smem:[#allocation32_spill]]  ;;  %s6060_s9 = sld [smem:[#allocation33_spill]] }
  0xc5   :  { %4641 = vmatprep.subr.mxu0 %v5288_v8 }
  0xc7   :  { %4629 = vmatmul.mubr.msk.f32.vlgmr.msra.gmra.mrb[0].mxu0 %vm211_vm0, %v5570_v7 }
  0xc8   :  { %4643 = vmatprep.mubr.msk.f32.mxu0 %vm5289_vm1, %v5288_v8 }
 0x19a   :  { %v4630_v10 = vpop.f32.mrb[0].mxu0 }
 0x19b   :  { %v284_v11 = vpop.f32.mrb[1].mxu0  ;;  %v5584_v13 = vadd.f32 %v4630_v10, %v4397_v9 }
 0x19c   :  { %v5580_v12 = vadd.f32 %v4397_v9, %v284_v11 }
 0x19e   :  { %294 = vrot.lane.b32.xlu0 %v5580_v12, %s5290_s11 }
 0x1a2   :  { %372 = vrot.lane.b32.xlu0 %v5584_v13, %s5290_s11 }
 0x1a6   :  { %548 = vrot.lane.b32.xlu0 %v5584_v13, %s5291_s13 }
 0x1aa   :  { %702 = vrot.lane.b32.xlu0 %v5584_v13, %s5292_s2 }
 0x210   :  { %v295_v14 = vpop.permute.xlu0 %294 }
 0x211   :  { %4632 = vmatpush3.xpose.msk.msra.mxu1 %vm296_vm2, %v295_v14 }
 0x212   :  { %4636 = vmatprep.subr.mxu1 %v5288_v8 }
 0x214   :  { %4634 = vmatmul.mubr.msk.f32.vlgmr.msra.gmra.mrb[0].mxu1 %vm296_vm2, %v5580_v12  ;;  %v373_v15 = vpop.permute.xlu0 %372 }
 0x215   :  { %4637 = vmatpush3.xpose.msk.msra.mxu1 %vm296_vm2, %v373_v15  ;;  %4638 = vmatprep.mubr.msk.f32.mxu1 %vm5289_vm1, %v5288_v8 }
 0x216   :  { %4646 = vmatprep.subr.mxu1 %v5288_v8 }
 0x218   :  { %4639 = vmatmul.mubr.msk.f32.vlgmr.msra.gmra.mrb[2].mxu1 %vm296_vm2, %v5584_v13  ;;  %v549_v16 = vpop.permute.xlu0 %548 }
 0x219   :  { %4647 = vmatpush3.msra.mxu1 %v549_v16  ;;  %4648 = vmatprep.mubr.msk.f32.mxu1 %vm5289_vm1, %v5288_v8 }
 0x21a   :  { %4656 = vmatprep.subr.mxu1 %v5288_v8 }
 0x21c   :  { %v703_v25 = vpop.permute.xlu0 %702 }
 0x2e7   :  { %v367_v17 = vpop.f32.mrb[0].mxu1 }
 0x2e8   :  { %v448_v18 = vmul.f32 0.35355338, %v367_v17  ;;  %v4635_v19 = vpop.f32.mrb[1].mxu1 }
 0x2ea   :  { %v450_v20 = vsel %vm296_vm2, %v448_v18, -inf }
 0x2eb   :  { %451 = vmax.xlane.f32.xlu0 %v450_v20  ;;  %v444_v21 = vpop.f32.mrb[2].mxu1 }
 0x2ec   :  { %v449_v22 = vmul.f32 0.35355338, %v444_v21  ;;  %v4640_v23 = vpop.f32.mrb[3].mxu1  ;;  %v197_v21 = vld [vmem:[#allocation7 + $0x8] sm:$0xff] }
 0x2ee   :  { %v453_v24 = vsel %vm296_vm2, %v449_v22, -inf }
 0x2ef   :  { %454 = vmax.xlane.f32.xlu1 %v453_v24 }
 0x301   :  { %472 = vrot.lane.b32.xlu0 %v5580_v12, %s5291_s13 }
 0x305   :  { %624 = vrot.lane.b32.xlu0 %v5580_v12, %s5292_s2 }
 0x378   :  { %v452_v26 = vpop.xlane.xlu0 %451 }
 0x379   :  { %v456_v33 = vsub.f32 %v448_v18, %v452_v26 }
 0x37b   :  { %v458_v34 = vmul.f32 1.442695, %v456_v33 }
 0x37c   :  { %v455_v27 = vpop.xlane.xlu1 %454  ;;  %v473_v28 = vpop.permute.xlu0 %472 }
 0x37d   :  { %v457_v29 = vsub.f32 %v449_v22, %v455_v27  ;;  %4642 = vmatpush3.msra.mxu0 %v473_v28  ;;  %v196_v22 = vld [vmem:[#allocation7] sm:$0xff] }
 0x37e   :  { %4651 = vmatprep.subr.mxu0 %v5288_v8 }
 0x37f   :  { %v460_v30 = vmul.f32 1.442695, %v457_v29 }
 0x380   :  { %v625_v45 = vpop.permute.xlu0 %624 }
 0x381   :  { %4988 = vpow2.f32 %v460_v30 }
 0x382   :  { %4990 = vpow2.f32 %v458_v34 }
 0x38b   :  { %v4989_v31 = vpop.eup %4988 }
 0x38c   :  { %v465_v32 = vsel %vm296_vm2, %v4989_v31, 0.0  ;;  %v4991_v35 = vpop.eup %4990 }
 0x38d   :  { %466 = vadd.xlane.f32.xlu1 %v465_v32  ;;  %v462_v36 = vsel %vm296_vm2, %v4991_v35, 0.0 }
 0x39e   :  { %704 = vrot.lane.b32.xlu1 %v5584_v13, %s5293_s29 }
 0x3c2   :  { %463 = vadd.xlane.f32.xlu1 %v462_v36 }
 0x3d3   :  { %626 = vrot.lane.b32.xlu1 %v5580_v12, %s5293_s29 }
 0x3d7   :  { %1120 = vrot.lane.b32.xlu1 %v5580_v12, %s5294_s1 }
 0x41a   :  { %v467_v37 = vpop.xlane.xlu1 %466 }
 0x41b   :  { %4992 = vrcp.f32 %v467_v37 }
 0x41e   :  { %v705_v40 = vpop.permute.xlu1 %704 }
 0x425   :  { %v4993_v38 = vpop.eup %4992 }
 0x426   :  { %v471_v39 = vmul.f32 %v4993_v38, %v4989_v31 }
 0x428   :  { %4649 = vmatmul.mubr.msk.f32.vlgmr.msra.gmra.mrb[4].mxu1 %vm296_vm2, %v471_v39 }
 0x429   :  { %4657 = vmatpush3.xpose.msk.msra.mxu1 %vm296_vm2, %v705_v40  ;;  %4658 = vmatprep.mubr.msk.f32.mxu1 %vm5289_vm1, %v5288_v8 }
 0x42a   :  { %4666 = vmatprep.subr.mxu1 %v5288_v8 }
 0x42c   :  { %4659 = vmatmul.mubr.msk.f32.vlgmr.msra.gmra.mrb[6].mxu1 %vm296_vm2, %v703_v25 }
 0x42d   :  { %4668 = vmatprep.mubr.msk.f32.mxu1 %vm5289_vm1, %v5288_v8 }
 0x44f   :  { %v464_v41 = vpop.xlane.xlu1 %463 }
 0x450   :  { %4994 = vrcp.f32 %v464_v41 }
 0x453   :  { %v627_v44 = vpop.permute.xlu1 %626 }
 0x457   :  { %v1121_v11 = vpop.permute.xlu1 %1120 }
 0x45a   :  { %v4995_v42 = vpop.eup %4994 }
 0x45b   :  { %v470_v43 = vmul.f32 %v4995_v42, %v4991_v35 }
 0x45d   :  { %4644 = vmatmul.mubr.msk.f32.vlgmr.msra.gmra.mrb[2].mxu0 %vm296_vm2, %v470_v43 }
 0x45e   :  { %4652 = vmatpush3.xpose.msk.msra.mxu0 %vm296_vm2, %v627_v44  ;;  %4653 = vmatprep.mubr.msk.f32.mxu0 %vm5289_vm1, %v5288_v8 }
 0x45f   :  { %4661 = vmatprep.subr.mxu0 %v5288_v8 }
 0x461   :  { %4654 = vmatmul.mubr.msk.f32.vlgmr.msra.gmra.mrb[4].mxu0 %vm296_vm2, %v625_v45 }
 0x462   :  { %4663 = vmatprep.mubr.msk.f32.mxu0 %vm5289_vm1, %v5288_v8 }
 0x4fb   :  { %v5636_v46 = vpop.f32.mrb[4].mxu1 }
 0x4fc   :  { %v4650_v47 = vpop.f32.mrb[5].mxu1 }
 0x4ff   :  { %v776_v48 = vpop.f32.mrb[6].mxu1 }
 0x500   :  { %v781_v49 = vmul.f32 0.35355338, %v776_v48  ;;  %v4660_v50 = vpop.f32.mrb[7].mxu1 }
 0x502   :  { %v785_v51 = vsel %vm296_vm2, %v781_v49, -inf }
 0x503   :  { %786 = vmax.xlane.f32.xlu0 %v785_v51 }
 0x519   :  { %880 = vrot.lane.b32.xlu0 %v5584_v13, %s5295_s3 }
 0x51d   :  { %1118 = vrot.lane.b32.xlu0 %v5580_v12, %s5296_s4 }
 0x521   :  { %1198 = vrot.lane.b32.xlu0 %v5584_v13, %s5294_s1 }
 0x530   :  { %v5645_v52 = vpop.f32.mrb[2].mxu0 }
 0x531   :  { %v4645_v53 = vpop.f32.mrb[3].mxu0 }
 0x534   :  { %v698_v54 = vpop.f32.mrb[4].mxu0 }
 0x535   :  { %v4655_v55 = vpop.f32.mrb[5].mxu0  ;;  %v780_v56 = vmul.f32 0.35355338, %v698_v54 }
 0x537   :  { %v782_v57 = vsel %vm296_vm2, %v780_v56, -inf }
 0x540   :  { %783 = vmax.xlane.f32.xlu0 %v782_v57 }
 0x556   :  { %804 = vrot.lane.b32.xlu0 %v5580_v12, %s5295_s3 }
 0x55a   :  { %1298 = vrot.lane.b32.xlu0 %v5580_v12, %s5297_s27 }
 0x55e   :  { %1535 = vrot.lane.b32.xlu0 %v5580_v12, %s5298_s28 }
 0x562   :  { %1613 = vrot.lane.b32.xlu0 %v5584_v13, %s5298_s28 }
 0x566   :  { %1533 = vrot.lane.b32.xlu0 %v5580_v12, %s5299_s6 }
 0x56a   :  { %1611 = vrot.lane.b32.xlu0 %v5584_v13, %s5299_s6 }
 0x590   :  { %v787_v58 = vpop.xlane.xlu0 %786 }
 0x591   :  { %v789_v59 = vsub.f32 %v781_v49, %v787_v58 }
 0x593   :  { %v792_v60 = vmul.f32 1.442695, %v789_v59 }
 0x594   :  { %v881_v61 = vpop.permute.xlu0 %880 }
 0x595   :  { %4996 = vpow2.f32 %v792_v60  ;;  %4667 = vmatpush3.msra.mxu1 %v881_v61 }
 0x596   :  { %4681 = vmatprep.subr.mxu1 %v5288_v8 }
 0x598   :  { %v1119_v0 = vpop.permute.xlu0 %1118 }
 0x59c   :  { %v1199_v1 = vpop.permute.xlu0 %1198 }
 0x59f   :  { %v4997_v62 = vpop.eup %4996 }
 0x5a0   :  { %v797_v63 = vsel %vm296_vm2, %v4997_v62, 0.0 }
 0x5a1   :  { %798 = vadd.xlane.f32.xlu1 %v797_v63 }
 0x5b2   :  { %1196 = vrot.lane.b32.xlu1 %v5584_v13, %s5296_s4 }
 0x5cd   :  { %v784_v2 = vpop.xlane.xlu0 %783 }
 0x5ce   :  { %v788_v3 = vsub.f32 %v780_v56, %v784_v2 }
 0x5d0   :  { %v790_v4 = vmul.f32 1.442695, %v788_v3 }
 0x5d1   :  { %v805_v6 = vpop.permute.xlu0 %804 }
 0x5d2   :  { %4998 = vpow2.f32 %v790_v4  ;;  %4662 = vmatpush3.msra.mxu0 %v805_v6 }
 0x5d3   :  { %4671 = vmatprep.subr.mxu0 %v197_v21 }
 0x5d5   :  { %v1299_v35 = vpop.permute.xlu0 %1298 }
 0x5d9   :  { %v1536_v50 = vpop.permute.xlu0 %1535 }
 0x5dc   :  { %v4999_v9 = vpop.eup %4998 }
 0x5dd   :  { %v794_v10 = vsel %vm296_vm2, %v4999_v9, 0.0  ;;  %v1614_v54 = vpop.permute.xlu0 %1613 }
 0x5de   :  { %795 = vadd.xlane.f32.xlu1 %v794_v10 }
 0x5e1   :  { %v1534_v56 = vpop.permute.xlu0 %1533 }
 0x5e5   :  { %v1612_v61 = vpop.permute.xlu0 %1611 }
 0x62e   :  { %v799_v14 = vpop.xlane.xlu1 %798 }
 0x62f   :  { %5000 = vrcp.f32 %v799_v14 }
 0x632   :  { %v1197_v17 = vpop.permute.xlu1 %1196 }
 0x639   :  { %v5001_v15 = vpop.eup %5000 }
 0x63a   :  { %v803_v16 = vmul.f32 %v5001_v15, %v4997_v62 }
 0x63c   :  { %4669 = vmatmul.mubr.msk.f32.vlgmr.msra.gmra.mrb[8].mxu1 %vm296_vm2, %v803_v16 }
 0x63d   :  { %4682 = vmatpush3.xpose.msk.msra.mxu1 %vm296_vm2, %v1121_v11  ;;  %4683 = vmatprep.mubr.msk.f32.mxu1 %vm5289_vm1, %v5288_v8 }
 0x63e   :  { %4686 = vmatprep.subr.mxu1 %v5288_v8 }
 0x640   :  { %4684 = vmatmul.mubr.msk.f32.vlgmr.msra.gmra.mrb[10].mxu1 %vm296_vm2, %v1119_v0 }
 0x641   :  { %4687 = vmatpush3.xpose.msk.msra.mxu1 %vm296_vm2, %v1199_v1  ;;  %4688 = vmatprep.mubr.msk.f32.mxu1 %vm5289_vm1, %v5288_v8 }
 0x642   :  { %4696 = vmatprep.subr.mxu1 %v5288_v8 }
 0x644   :  { %4689 = vmatmul.mubr.msk.f32.vlgmr.msra.gmra.mrb[12].mxu1 %vm296_vm2, %v1197_v17 }
 0x645   :  { %4698 = vmatprep.mubr.msk.f32.mxu1 %vm5289_vm1, %v5288_v8 }
 0x66b   :  { %v796_v18 = vpop.xlane.xlu1 %795 }
 0x66c   :  { %5002 = vrcp.f32 %v796_v18 }
 0x676   :  { %v5003_v19 = vpop.eup %5002 }
 0x677   :  { %v802_v20 = vmul.f32 %v5003_v19, %v4999_v9 }
 0x679   :  { %4664 = vmatmul.mubr.msk.f32.vlgmr.msra.gmra.mrb[6].mxu0 %vm296_vm2, %v802_v20 }
 0x67a   :  { %4672 = vmatpush3.msra.mxu0 %v197_v21 }
 0x67b   :  { %4676 = vmatprep.subr.mxu0 %v196_v22 }
 0x70f   :  { %v952_v23 = vpop.f32.mrb[8].mxu1 }
 0x710   :  { %v4670_v24 = vpop.f32.mrb[9].mxu1 }
 0x713   :  { %v1192_v25 = vpop.f32.mrb[10].mxu1 }
 0x714   :  { %v1274_v26 = vmul.f32 0.35355338, %v1192_v25  ;;  %v4685_v27 = vpop.f32.mrb[11].mxu1  ;;  %v199_v25 = vld [vmem:[#allocation7 + $0x18] sm:$0xff] }
 0x716   :  { %v1276_v28 = vsel %vm296_vm2, %v1274_v26, -inf }
 0x717   :  { %v1270_v29 = vpop.f32.mrb[12].mxu1  ;;  %1277 = vmax.xlane.f32.xlu1 %v1276_v28 }
 0x718   :  { %v1275_v30 = vmul.f32 0.35355338, %v1270_v29  ;;  %v4690_v31 = vpop.f32.mrb[13].mxu1 }
 0x71a   :  { %v1279_v32 = vsel %vm296_vm2, %v1275_v30, -inf }
 0x71b   :  { %1280 = vmax.xlane.f32.xlu1 %v1279_v32 }
 0x74c   :  { %v876_v33 = vpop.f32.mrb[6].mxu0 }
 0x74d   :  { %v4665_v34 = vpop.f32.mrb[7].mxu0  ;;  %4673 = vmatprep.mubr.msk.f32.mxu0 %vm296_vm2, %v876_v33 }
 0x74e   :  { %4674 = vmatmul.mubr.msk.f32.vlgmr.msra.gmra.mrb[8].mxu0 %vm296_vm2, %v952_v23 }
 0x74f   :  { %4678 = vmatprep.mubr.msk.f32.mxu0 %vm296_vm2, %v5645_v52  ;;  %4677 = vmatpush3.msra.mxu0 %v196_v22 }
 0x750   :  { %4691 = vmatprep.subr.mxu0 %v5288_v8 }
 0x756   :  { %4679 = vmatmul.mubr.msk.f32.vlgmr.msra.gmra.mrb[8].mxu0 %vm296_vm2, %v5636_v46  ;;  %v198_v46 = vld [vmem:[#allocation7 + $0x10] sm:$0xff] }
 0x757   :  { %4692 = vmatpush3.msra.mxu0 %v1299_v35  ;;  %4693 = vmatprep.mubr.msk.f32.mxu0 %vm5289_vm1, %v5288_v8 }
 0x758   :  { %4701 = vmatprep.subr.mxu0 %v198_v46 }
 0x7a4   :  { %v1278_v36 = vpop.xlane.xlu1 %1277 }
 0x7a5   :  { %v1282_v37 = vsub.f32 %v1274_v26, %v1278_v36 }
 0x7a7   :  { %v1284_v38 = vmul.f32 1.442695, %v1282_v37 }
 0x7a8   :  { %v1281_v39 = vpop.xlane.xlu1 %1280 }
 0x7a9   :  { %5004 = vpow2.f32 %v1284_v38  ;;  %v1283_v40 = vsub.f32 %v1275_v30, %v1281_v39 }
 0x7ab   :  { %v1286_v41 = vmul.f32 1.442695, %v1283_v40 }
 0x7ad   :  { %5006 = vpow2.f32 %v1286_v41 }
 0x7b3   :  { %v5005_v42 = vpop.eup %5004 }
 0x7b4   :  { %v1288_v43 = vsel %vm296_vm2, %v5005_v42, 0.0 }
 0x7b5   :  { %1289 = vadd.xlane.f32.xlu1 %v1288_v43 }
 0x7b7   :  { %v5007_v44 = vpop.eup %5006 }
 0x7b8   :  { %v1291_v45 = vsel %vm296_vm2, %v5007_v44, 0.0 }
 0x7b9   :  { %1292 = vadd.xlane.f32.xlu1 %v1291_v45 }
 0x7ca   :  { %1374 = vrot.lane.b32.xlu1 %v5584_v13, %s5297_s27 }
 0x842   :  { %v1290_v47 = vpop.xlane.xlu1 %1289 }
 0x843   :  { %5008 = vrcp.f32 %v1290_v47 }
 0x846   :  { %v1293_v48 = vpop.xlane.xlu1 %1292 }
 0x847   :  { %5010 = vrcp.f32 %v1293_v48 }
 0x84a   :  { %v1375_v49 = vpop.permute.xlu1 %1374 }
 0x84b   :  { %4697 = vmatpush3.msra.mxu1 %v1375_v49 }
 0x84c   :  { %4706 = vmatprep.subr.mxu1 %v5288_v8 }
 0x84d   :  { %v5009_v51 = vpop.eup %5008 }
 0x84e   :  { %v1296_v52 = vmul.f32 %v5009_v51, %v5005_v42 }
 0x850   :  { %4694 = vmatmul.mubr.msk.f32.vlgmr.msra.gmra.mrb[10].mxu0 %vm296_vm2, %v1296_v52  ;;  %v2006_v52 = vld [vmem:[#allocation8 + $0x10] sm:$0xff] }
 0x851   :  { %v5011_v53 = vpop.eup %5010  ;;  %4702 = vmatpush3.msra.mxu0 %v198_v46 }
 0x852   :  { %v1297_v55 = vmul.f32 %v5011_v53, %v5007_v44  ;;  %4711 = vmatprep.subr.mxu0 %v5288_v8  ;;  %v2007_v53 = vld [vmem:[#allocation8 + $0x18] sm:$0xff] }
 0x854   :  { %4699 = vmatmul.mubr.msk.f32.vlgmr.msra.gmra.mrb[14].mxu1 %vm296_vm2, %v1297_v55  ;;  %v2098_v55 = vld [vmem:[#allocation10] sm:$0xff] }
 0x855   :  { %4707 = vmatpush3.xpose.msk.msra.mxu1 %vm296_vm2, %v1536_v50  ;;  %4708 = vmatprep.mubr.msk.f32.mxu1 %vm5289_vm1, %v5288_v8  ;;  %v2005_v50 = vld [vmem:[#allocation8 + $0x8] sm:$0xff] }
 0x856   :  { %4716 = vmatprep.subr.mxu1 %v5288_v8 }
 0x858   :  { %4709 = vmatmul.mubr.msk.f32.vlgmr.msra.gmra.mrb[16].mxu1 %vm296_vm2, %v1534_v56  ;;  %v2099_v56 = vld [vmem:[#allocation10 + $0x8] sm:$0xff] }
 0x859   :  { %4718 = vmatprep.mubr.msk.f32.mxu1 %vm5289_vm1, %v5288_v8 }
 0x923   :  { %v1370_v57 = vpop.f32.mrb[10].mxu0 }
 0x924   :  { %v4695_v58 = vpop.f32.mrb[11].mxu0  ;;  %4703 = vmatprep.mubr.msk.f32.mxu0 %vm296_vm2, %v1370_v57  ;;  %v4913_v57 = vpack.c.bf16 %v2099_v56, %v2098_v55 }
 0x927   :  { %v1446_v59 = vpop.f32.mrb[14].mxu1 }
 0x928   :  { %v4700_v60 = vpop.f32.mrb[15].mxu1  ;;  %4704 = vmatmul.mubr.msk.f32.vlgmr.msra.gmra.mrb[8].mxu0 %vm296_vm2, %v1446_v59 }
 0x929   :  { %4712 = vmatpush3.xpose.msk.msra.mxu0 %vm296_vm2, %v1614_v54  ;;  %4713 = vmatprep.mubr.msk.f32.mxu0 %vm5289_vm1, %v5288_v8  ;;  %v4909_v54 = vpack.c.bf16 %v2007_v53, %v2006_v52 }
 0x92a   :  { %4721 = vmatprep.subr.mxu0 %v5288_v8 }
 0x92b   :  { %v1607_v62 = vpop.f32.mrb[16].mxu1 }
 0x92c   :  { %v1689_v63 = vmul.f32 0.35355338, %v1607_v62  ;;  %v4710_v0 = vpop.f32.mrb[17].mxu1  ;;  %4714 = vmatmul.mubr.msk.f32.vlgmr.msra.gmra.mrb[12].mxu0 %vm296_vm2, %v1612_v61 }
 0x92d   :  { %4723 = vmatprep.mubr.msk.f32.mxu0 %vm5289_vm1, %v5288_v8 }
 0x92e   :  { %v1691_v1 = vsel %vm296_vm2, %v1689_v63, -inf }
 0x92f   :  { %1692 = vmax.xlane.f32.xlu1 %v1691_v1  ;;  %v4433_v1 = vld [vmem:[%s6059_s5] ss:$0 sm:$0xff]  ;;  %s6062_s5 = sld [smem:[#allocation31_spill]] }
 0x9bc   :  { %v1693_v2 = vpop.xlane.xlu1 %1692 }
 0x9bd   :  { %v1697_v3 = vsub.f32 %v1689_v63, %v1693_v2 }
 0x9bf   :  { %v1699_v4 = vmul.f32 1.442695, %v1697_v3 }
 0x9c1   :  { %5012 = vpow2.f32 %v1699_v4 }
 0x9cb   :  { %v5013_v14 = vpop.eup %5012 }
 0x9cc   :  { %v1703_v15 = vsel %vm296_vm2, %v5013_v14, 0.0 }
 0x9ff   :  { %v1685_v6 = vpop.f32.mrb[12].mxu0 }
 0xa00   :  { %v1690_v9 = vmul.f32 0.35355338, %v1685_v6  ;;  %v4715_v10 = vpop.f32.mrb[13].mxu0  ;;  %v4434_v6 = vld [vmem:[%s6060_s9] ss:$0 sm:$0xff]  ;;  %s6063_s9 = sld [smem:[#allocation34_spill]] }
 0xa02   :  { %v1694_v11 = vsel %vm296_vm2, %v1690_v9, -inf }
 0xa03   :  { %1695 = vmax.xlane.f32.xlu0 %v1694_v11 }
 0xa06   :  { %v4441_v53 = vld [vmem:[%s6063_s9] ss:$0 sm:$0xff] }
 0xa07   :  { %1704 = vadd.xlane.f32.xlu0 %v1703_v15  ;;  %v2100_v15 = vld [vmem:[#allocation10 + $0x10] sm:$0xff] }
 0xa1d   :  { %1713 = vrot.lane.b32.xlu0 %v5580_v12, %s5300_s30 }
 0xa90   :  { %v1696_v16 = vpop.xlane.xlu0 %1695 }
 0xa91   :  { %v1698_v17 = vsub.f32 %v1690_v9, %v1696_v16  ;;  %v2101_v16 = vld [vmem:[#allocation10 + $0x18] sm:$0xff] }
 0xa93   :  { %v1701_v18 = vmul.f32 1.442695, %v1698_v17  ;;  %v4917_v17 = vpack.c.bf16 %v2101_v16, %v2100_v15 }
 0xa94   :  { %v1705_v19 = vpop.xlane.xlu0 %1704 }
 0xa95   :  { %5014 = vpow2.f32 %v1701_v18 }
 0xa96   :  { %5016 = vrcp.f32 %v1705_v19 }
 0xa98   :  { %v1714_v20 = vpop.permute.xlu0 %1713 }
 0xa99   :  { %4717 = vmatpush3.msra.mxu1 %v1714_v20 }
 0xa9f   :  { %v5015_v21 = vpop.eup %5014 }
 0xaa0   :  { %v5017_v22 = vpop.eup %5016  ;;  %v1706_v23 = vsel %vm296_vm2, %v5015_v21, 0.0 }
 0xaa1   :  { %v1711_v24 = vmul.f32 %v5017_v22, %v5013_v14  ;;  %1707 = vadd.xlane.f32.xlu1 %v1706_v23 }
 0xaa3   :  { %4719 = vmatmul.mubr.msk.f32.vlgmr.msra.gmra.mrb[18].mxu1 %vm296_vm2, %v1711_v24 }
 0xab2   :  { %1789 = vrot.lane.b32.xlu1 %v5584_v13, %s5300_s30  ;;  %v4432_v13 = vld [vmem:[%s6058_s15] ss:$0 sm:$0xff]  ;;  %s6061_s15 = sld [smem:[#allocation29_spill]] }
 0xab8   :  { %v4435_v18 = vld [vmem:[%s6061_s15] ss:$0 sm:$0xff] }
 0xb2e   :  { %v1708_v12 = vpop.xlane.xlu1 %1707 }
 0xb2f   :  { %5018 = vrcp.f32 %v1708_v12  ;;  %v4438_v12 = vld [vmem:[%s6062_s5] ss:$0 sm:$0xff] }
 0xb32   :  { %v1790_v26 = vpop.permute.xlu1 %1789 }
 0xb33   :  { %4722 = vmatpush3.msra.mxu0 %v1790_v26 }
 0xb34   :  { %4726 = vmatprep.subr.mxu0 %v199_v25 }
 0xb39   :  { %v5019_v27 = vpop.eup %5018 }
 0xb3a   :  { %v1712_v28 = vmul.f32 %v5019_v27, %v5015_v21 }
 0xb3c   :  { %4724 = vmatmul.mubr.msk.f32.vlgmr.msra.gmra.mrb[14].mxu0 %vm296_vm2, %v1712_v28 }
 0xb3d   :  { %4727 = vmatpush3.msra.mxu0 %v199_v25 }
 0xb3e   :  { %4914 = vmatprep.subr.bf16.mxu0 %v4913_v57 }
 0xb76   :  { %v1785_v29 = vpop.f32.mrb[18].mxu1 }
 0xb77   :  { %v4720_v30 = vpop.f32.mrb[19].mxu1  ;;  %4728 = vmatprep.mubr.msk.f32.mxu0 %vm296_vm2, %v1785_v29 }
 0xc0f   :  { %v1861_v31 = vpop.f32.mrb[14].mxu0 }
 0xc10   :  { %v4725_v32 = vpop.f32.mrb[15].mxu0  ;;  %4729 = vmatmul.mubr.msk.f32.vlgmr.msra.gmra.mrb[8].mxu0 %vm296_vm2, %v1861_v31 }
 0xc11   :  { %4916 = vmatpush3.bf16.msra.mxu0 %v4913_v57  ;;  %v4442_v57 = vld [vmem:[%s6015_s12] ss:$0 sm:$0xff] }
 0xc12   :  { %4918 = vmatprep.subr.bf16.mxu0 %v4917_v17 }
 0xc15   :  { %4920 = vmatpush3.bf16.msra.mxu0 %v4917_v17 }
 0xc16   :  { %4764 = vmatprep.subr.mxu0 %v5288_v8 }
 0xce3   :  { %v4730_v33 = vpop.f32.mrb[8].mxu0 }
 0xce4   :  { %v1956_v34 = vadd.f32 %v4730_v33, %v4432_v13  ;;  %v1937_v35 = vpop.f32.mrb[9].mxu0 }
 0xce5   :  { %v1955_v36 = vadd.f32 %v4432_v13, %v1937_v35 }
 0xce6   :  { %v1958_v37 = vadd.f32 %v1956_v34, %v5570_v7 }
 0xce7   :  { %v1957_v38 = vadd.f32 %v1955_v36, %v5563_v5  ;;  %v2004_v5 = vld [vmem:[#allocation8] sm:$0xff] }
 0xce8   :  { %v1964_v39 = vsel %vm211_vm0, %v1958_v37, 0.0  ;;  %v4905_v51 = vpack.c.bf16 %v2005_v50, %v2004_v5 }
 0xce9   :  { %1965 = vadd.xlane.f32.xlu0 %v1964_v39  ;;  %v1961_v40 = vsel %vm211_vm0, %v1957_v38, 0.0 }
 0xcea   :  { %1962 = vadd.xlane.f32.xlu1 %v1961_v40  ;;  %4906 = vmatprep.subr.bf16.mxu1 %v4905_v51 }
 0xceb   :  { %4908 = vmatpush3.bf16.msra.mxu1 %v4905_v51 }
 0xcec   :  { %4910 = vmatprep.subr.bf16.mxu1 %v4909_v54 }
 0xcef   :  { %4912 = vmatpush3.bf16.msra.mxu1 %v4909_v54 }
 0xd76   :  { %v1966_v41 = vpop.xlane.xlu0 %1965 }
 0xd77   :  { %v1969_v42 = vmul.f32 0.03125, %v1966_v41  ;;  %v1963_v43 = vpop.xlane.xlu1 %1962 }
 0xd78   :  { %v1968_v44 = vmul.f32 0.03125, %v1963_v43  ;;  %v2241_v43 = vld [vmem:[#allocation11 + $0x8] sm:$0xff] }
 0xd79   :  { %v1971_v45 = vsub.f32 %v1958_v37, %v1969_v42  ;;  %v2240_v42 = vld [vmem:[#allocation11] sm:$0xff] }
 0xd7a   :  { %v1970_v46 = vsub.f32 %v1957_v38, %v1968_v44  ;;  %v4921_v44 = vpack.c.bf16 %v2241_v43, %v2240_v42 }
 0xd7b   :  { %v1973_v47 = vmul.f32 %v1971_v45, %v1971_v45 }
 0xd7c   :  { %v1972_v48 = vmul.f32 %v1970_v46, %v1970_v46  ;;  %4922 = vmatprep.subr.bf16.mxu1 %v4921_v44 }
 0xd7d   :  { %v1977_v49 = vsel %vm211_vm0, %v1973_v47, 0.0 }
 0xd7e   :  { %1978 = vadd.xlane.f32.xlu1 %v1977_v49  ;;  %v1974_v7 = vsel %vm211_vm0, %v1972_v48, 0.0 }
 0xd7f   :  { %1975 = vadd.xlane.f32.xlu0 %v1974_v7 }
 0xe0b   :  { %v1979_v58 = vpop.xlane.xlu1 %1978 }
 0xe0c   :  { %v1981_v59 = vmul.f32 0.03125, %v1979_v58  ;;  %v1976_v60 = vpop.xlane.xlu0 %1975 }
 0xe0d   :  { %v1980_v61 = vmul.f32 0.03125, %v1976_v60 }
 0xe0e   :  { %v1983_v62 = vadd.f32 1e-05, %v1981_v59 }
 0xe0f   :  { %v1982_v63 = vadd.f32 1e-05, %v1980_v61 }
 0xe10   :  { %5020 = vrsqrt.f32 %v1983_v62  ;;  %v4443_v62 = vld [vmem:[%s6017_s14] ss:$0 sm:$0xff]  ;;  %s6064_s14 = sld [smem:[#allocation35_spill]] }
 0xe11   :  { %5022 = vrsqrt.f32 %v1982_v63 }
 0xe1a   :  { %v5021_v0 = vpop.eup %5020 }
 0xe1b   :  { %v5023_v2 = vpop.eup %5022  ;;  %v1987_v3 = vmul.f32 %v5021_v0, %v1971_v45  ;;  %v2242_v45 = vld [vmem:[#allocation11 + $0x10] sm:$0xff] }
 0xe1c   :  { %v1986_v4 = vmul.f32 %v5023_v2, %v1970_v46  ;;  %v2243_v46 = vld [vmem:[#allocation11 + $0x18] sm:$0xff] }
 0xe1d   :  { %v1995_v9 = vmul.f32 %v4433_v1, %v1987_v3  ;;  %v4925_v47 = vpack.c.bf16 %v2243_v46, %v2242_v45 }
 0xe1e   :  { %v1994_v10 = vmul.f32 %v4433_v1, %v1986_v4 }
 0xe1f   :  { %v2003_v14 = vadd.f32 %v4434_v6, %v1995_v9 }
 0xe20   :  { %v2002_v11 = vadd.f32 %v4434_v6, %v1994_v10 }
 0xe22   :  { %4739 = vmatprep.mubr.msk.f32.mxu1 %vm211_vm0, %v2002_v11 }
 0xe23   :  { %4740 = vmatmul.mubr.msk.f32.vlgmr.msra.gmra.mrb[20].mxu1 %vm211_vm0, %v2003_v14 }
 0xe24   :  { %4924 = vmatpush3.bf16.msra.mxu1 %v4921_v44 }
 0xe25   :  { %4926 = vmatprep.subr.bf16.mxu1 %v4925_v47 }
 0xe28   :  { %4928 = vmatpush3.bf16.msra.mxu1 %v4925_v47 }
 0xe29   :  { %4769 = vmatprep.subr.mxu1 %v5288_v8 }
 0xef6   :  { %v4741_v19 = vpop.f32.mrb[20].mxu1 }
 0xef7   :  { %v2093_v20 = vadd.f32 %v4741_v19, %v4435_v18  ;;  %v2087_v21 = vpop.f32.mrb[21].mxu1 }
 0xef8   :  { %v2088_v22 = vadd.f32 %v4435_v18, %v2087_v21 }
 0xef9   :  { %v2097_v24 = vmax.f32 %v2093_v20, 0.0 }
 0xefa   :  { %v2096_v23 = vmax.f32 %v2088_v22, 0.0 }
 0xefc   :  { %4750 = vmatprep.mubr.msk.f32.mxu0 %vm211_vm0, %v2096_v23 }
 0xefd   :  { %4751 = vmatmul.mubr.msk.f32.vlgmr.msra.gmra.mrb[16].mxu0 %vm211_vm0, %v2097_v24 }
 0xefe   :  { %4766 = vmatprep.mubr.msk.f32.mxu0 %vm5289_vm1, %v5288_v8 }
 0xfd0   :  { %v4752_v25 = vpop.f32.mrb[16].mxu0 }
 0xfd1   :  { %v2187_v26 = vadd.f32 %v4752_v25, %v4438_v12  ;;  %v2181_v27 = vpop.f32.mrb[17].mxu0 }
 0xfd2   :  { %v2182_v28 = vadd.f32 %v4438_v12, %v2181_v27 }
 0xfd3   :  { %v2191_v29 = vadd.f32 %v2187_v26, %v2003_v14 }
 0xfd4   :  { %v2190_v30 = vadd.f32 %v2182_v28, %v2002_v11 }
 0xfd5   :  { %v2197_v31 = vsel %vm211_vm0, %v2191_v29, 0.0 }
 0xfd6   :  { %2198 = vadd.xlane.f32.xlu1 %v2197_v31  ;;  %v2194_v32 = vsel %vm211_vm0, %v2190_v30, 0.0 }
 0xfd7   :  { %2195 = vadd.xlane.f32.xlu0 %v2194_v32 }
0x1063   :  { %v2199_v13 = vpop.xlane.xlu1 %2198 }
0x1064   :  { %v2201_v33 = vmul.f32 0.03125, %v2199_v13  ;;  %v2196_v34 = vpop.xlane.xlu0 %2195 }
0x1065   :  { %v2200_v35 = vmul.f32 0.03125, %v2196_v34 }
0x1066   :  { %v2203_v36 = vsub.f32 %v2191_v29, %v2201_v33 }
0x1067   :  { %v2202_v37 = vsub.f32 %v2190_v30, %v2200_v35 }
0x1068   :  { %v2205_v38 = vmul.f32 %v2203_v36, %v2203_v36 }
0x1069   :  { %v2204_v39 = vmul.f32 %v2202_v37, %v2202_v37 }
0x106a   :  { %v2209_v40 = vsel %vm211_vm0, %v2205_v38, 0.0 }
0x106b   :  { %2210 = vadd.xlane.f32.xlu1 %v2209_v40  ;;  %v2206_v41 = vsel %vm211_vm0, %v2204_v39, 0.0 }
0x106c   :  { %2207 = vadd.xlane.f32.xlu0 %v2206_v41 }
0x10f8   :  { %v2211_v48 = vpop.xlane.xlu1 %2210 }
0x10f9   :  { %v2213_v49 = vmul.f32 0.03125, %v2211_v48  ;;  %v2208_v7 = vpop.xlane.xlu0 %2207 }
0x10fa   :  { %v2212_v5 = vmul.f32 0.03125, %v2208_v7 }
0x10fb   :  { %v2215_v50 = vadd.f32 1e-05, %v2213_v49 }
0x10fc   :  { %v2214_v51 = vadd.f32 1e-05, %v2212_v5 }
0x10fd   :  { %5024 = vrsqrt.f32 %v2215_v50 }
0x10fe   :  { %5026 = vrsqrt.f32 %v2214_v51 }
0x1107   :  { %v5025_v52 = vpop.eup %5024 }
0x1108   :  { %v5027_v54 = vpop.eup %5026  ;;  %v2219_v55 = vmul.f32 %v5025_v52, %v2203_v36 }
0x1109   :  { %v2218_v56 = vmul.f32 %v5027_v54, %v2202_v37 }
0x110a   :  { %v2227_v58 = vmul.f32 %v4441_v53, %v2219_v55 }
0x110b   :  { %v2226_v59 = vmul.f32 %v4441_v53, %v2218_v56 }
0x110c   :  { %v5767_v61 = vadd.f32 %v4442_v57, %v2227_v58 }
0x110d   :  { %v5765_v60 = vadd.f32 %v4442_v57, %v2226_v59 }
0x110f   :  { %4761 = vmatprep.mubr.msk.f32.mxu1 %vm211_vm0, %v5765_v60 }
0x1110   :  { %4762 = vmatmul.mubr.msk.f32.vlgmr.msra.gmra.mrb[22].mxu1 %vm211_vm0, %v5767_v61 }
0x1111   :  { %4771 = vmatprep.mubr.msk.f32.mxu1 %vm5289_vm1, %v5288_v8 }
0x11e3   :  { %v4763_v63 = vpop.f32.mrb[22].mxu1 }
0x11e4   :  { %v5778_v0 = vadd.f32 %v4763_v63, %v4443_v62  ;;  %v2323_v1 = vpop.f32.mrb[23].mxu1 }
0x11e5   :  { %v5780_v2 = vadd.f32 %v4443_v62, %v2323_v1 }
0x11e6   :  { %2410 = vrot.lane.b32.xlu0 %v5778_v0, %s5290_s11 }
0x11e7   :  { %2333 = vrot.lane.b32.xlu1 %v5780_v2, %s5290_s11 }
0x1258   :  { %v2411_v3 = vpop.permute.xlu0 %2410 }
0x1259   :  { %4770 = vmatpush3.xpose.msk.msra.mxu1 %vm296_vm2, %v2411_v3  ;;  %v2334_v4 = vpop.permute.xlu1 %2333 }
0x125a   :  { %4765 = vmatpush3.xpose.msk.msra.mxu0 %vm296_vm2, %v2334_v4  ;;  %4779 = vmatprep.subr.mxu1 %v5288_v8 }
0x125b   :  { %4774 = vmatprep.subr.mxu0 %v5288_v8 }
0x125c   :  { %4772 = vmatmul.mubr.msk.f32.vlgmr.msra.gmra.mrb[24].mxu1 %vm296_vm2, %v5778_v0 }
0x125d   :  { %4767 = vmatmul.mubr.msk.f32.vlgmr.msra.gmra.mrb[18].mxu0 %vm296_vm2, %v5780_v2  ;;  %4781 = vmatprep.mubr.msk.f32.mxu1 %vm5289_vm1, %v5288_v8 }
0x125e   :  { %4776 = vmatprep.mubr.msk.f32.mxu0 %vm5289_vm1, %v5288_v8 }
0x132f   :  { %v2482_v6 = vpop.f32.mrb[24].mxu1 }
0x1330   :  { %v2487_v9 = vmul.f32 0.35355338, %v2482_v6  ;;  %v2405_v10 = vpop.f32.mrb[18].mxu0  ;;  %v4773_v11 = vpop.f32.mrb[25].mxu1 }
0x1331   :  { %v4768_v14 = vpop.f32.mrb[19].mxu0  ;;  %v2486_v21 = vmul.f32 0.35355338, %v2405_v10 }
0x1332   :  { %v2491_v15 = vsel %vm296_vm2, %v2487_v9, -inf }
0x1333   :  { %2492 = vmax.xlane.f32.xlu1 %v2491_v15  ;;  %v2488_v22 = vsel %vm296_vm2, %v2486_v21, -inf }
0x1344   :  { %2742 = vrot.lane.b32.xlu1 %v5778_v0, %s5293_s29 }
0x1348   :  { %2740 = vrot.lane.b32.xlu1 %v5778_v0, %s5292_s2 }
0x13c0   :  { %v2493_v16 = vpop.xlane.xlu1 %2492 }
0x13c1   :  { %v2495_v17 = vsub.f32 %v2487_v9, %v2493_v16 }
0x13c3   :  { %v2498_v18 = vmul.f32 1.442695, %v2495_v17 }
0x13c4   :  { %v2743_v25 = vpop.permute.xlu1 %2742 }
0x13c5   :  { %5028 = vpow2.f32 %v2498_v18 }
0x13c8   :  { %v2741_v27 = vpop.permute.xlu1 %2740 }
0x13cf   :  { %v5029_v19 = vpop.eup %5028 }
0x13d0   :  { %v2503_v20 = vsel %vm296_vm2, %v5029_v19, 0.0 }
0x13d1   :  { %2504 = vadd.xlane.f32.xlu0 %v2503_v20 }
0x13e7   :  { %2586 = vrot.lane.b32.xlu0 %v5778_v0, %s5291_s13 }
0x1406   :  { %2489 = vmax.xlane.f32.xlu0 %v2488_v22 }
0x141c   :  { %2510 = vrot.lane.b32.xlu0 %v5780_v2, %s5291_s13 }
0x1420   :  { %2662 = vrot.lane.b32.xlu0 %v5780_v2, %s5292_s2 }
0x145e   :  { %v2505_v23 = vpop.xlane.xlu0 %2504 }
0x145f   :  { %5030 = vrcp.f32 %v2505_v23 }
0x1462   :  { %v2587_v24 = vpop.permute.xlu0 %2586 }
0x1463   :  { %4780 = vmatpush3.msra.mxu1 %v2587_v24 }
0x1464   :  { %4789 = vmatprep.subr.mxu1 %v5288_v8 }
0x1469   :  { %v5031_v12 = vpop.eup %5030 }
0x146a   :  { %v2509_v26 = vmul.f32 %v5031_v12, %v5029_v19  ;;  %v2237_v12 = vld [vmem:[#allocation13 + $0x8] sm:$0xff] }
0x146c   :  { %4782 = vmatmul.mubr.msk.f32.vlgmr.msra.gmra.mrb[26].mxu1 %vm296_vm2, %v2509_v26 }
0x146d   :  { %4790 = vmatpush3.xpose.msk.msra.mxu1 %vm296_vm2, %v2743_v25  ;;  %4791 = vmatprep.mubr.msk.f32.mxu1 %vm5289_vm1, %v5288_v8  ;;  %v2236_v25 = vld [vmem:[#allocation13] sm:$0xff] }
0x146e   :  { %4799 = vmatprep.subr.mxu1 %v5288_v8 }
0x1470   :  { %4792 = vmatmul.mubr.msk.f32.vlgmr.msra.gmra.mrb[28].mxu1 %vm296_vm2, %v2741_v27 }
0x1471   :  { %4801 = vmatprep.mubr.msk.f32.mxu1 %vm5289_vm1, %v5288_v8 }
0x1493   :  { %v2490_v28 = vpop.xlane.xlu0 %2489 }
0x1494   :  { %v2494_v29 = vsub.f32 %v2486_v21, %v2490_v28 }
0x1496   :  { %v2496_v30 = vmul.f32 1.442695, %v2494_v29 }
0x1497   :  { %v2511_v31 = vpop.permute.xlu0 %2510 }
0x1498   :  { %5032 = vpow2.f32 %v2496_v30  ;;  %4775 = vmatpush3.msra.mxu0 %v2511_v31 }
0x1499   :  { %4784 = vmatprep.subr.mxu0 %v5288_v8 }
0x149b   :  { %v2663_v39 = vpop.permute.xlu0 %2662 }
0x14a2   :  { %v5033_v32 = vpop.eup %5032 }
0x14a3   :  { %v2500_v13 = vsel %vm296_vm2, %v5033_v32, 0.0 }
0x14a4   :  { %2501 = vadd.xlane.f32.xlu1 %v2500_v13 }
0x14b5   :  { %2664 = vrot.lane.b32.xlu1 %v5780_v2, %s5293_s29 }
0x1531   :  { %v2502_v33 = vpop.xlane.xlu1 %2501 }
0x1532   :  { %5034 = vrcp.f32 %v2502_v33 }
0x1535   :  { %v2665_v36 = vpop.permute.xlu1 %2664 }
0x153c   :  { %v5035_v34 = vpop.eup %5034 }
0x153d   :  { %v2508_v35 = vmul.f32 %v5035_v34, %v5033_v32 }
0x153f   :  { %4777 = vmatmul.mubr.msk.f32.vlgmr.msra.gmra.mrb[20].mxu0 %vm296_vm2, %v2508_v35  ;;  %v5825_v37 = vpop.f32.mrb[26].mxu1 }
0x1540   :  { %4785 = vmatpush3.xpose.msk.msra.mxu0 %vm296_vm2, %v2665_v36  ;;  %v4783_v38 = vpop.f32.mrb[27].mxu1  ;;  %4786 = vmatprep.mubr.msk.f32.mxu0 %vm5289_vm1, %v5288_v8 }
0x1541   :  { %4794 = vmatprep.subr.mxu0 %v5288_v8  ;;  %v2238_v38 = vld [vmem:[#allocation13 + $0x10] sm:$0xff] }
0x1543   :  { %4787 = vmatmul.mubr.msk.f32.vlgmr.msra.gmra.mrb[22].mxu0 %vm296_vm2, %v2663_v39  ;;  %v2814_v40 = vpop.f32.mrb[28].mxu1 }
0x1544   :  { %v2819_v41 = vmul.f32 0.35355338, %v2814_v40  ;;  %v4793_v42 = vpop.f32.mrb[29].mxu1  ;;  %4796 = vmatprep.mubr.msk.f32.mxu0 %vm5289_vm1, %v5288_v8 }
0x1546   :  { %v2823_v43 = vsel %vm296_vm2, %v2819_v41, -inf }
0x1547   :  { %2824 = vmax.xlane.f32.xlu1 %v2823_v43 }
0x1558   :  { %3158 = vrot.lane.b32.xlu1 %v5780_v2, %s5294_s1 }
0x155c   :  { %3156 = vrot.lane.b32.xlu1 %v5780_v2, %s5296_s4 }
0x1560   :  { %3234 = vrot.lane.b32.xlu1 %v5778_v0, %s5296_s4 }
0x15d4   :  { %v2825_v44 = vpop.xlane.xlu1 %2824 }
0x15d5   :  { %v2827_v45 = vsub.f32 %v2819_v41, %v2825_v44 }
0x15d7   :  { %v2830_v46 = vmul.f32 1.442695, %v2827_v45 }
0x15d8   :  { %v3159_v55 = vpop.permute.xlu1 %3158 }
0x15d9   :  { %5036 = vpow2.f32 %v2830_v46 }
0x15dc   :  { %v3157_v58 = vpop.permute.xlu1 %3156 }
0x15e0   :  { %v3235_v62 = vpop.permute.xlu1 %3234 }
0x15e3   :  { %v5037_v47 = vpop.eup %5036 }
0x15e4   :  { %v2835_v48 = vsel %vm296_vm2, %v5037_v47, 0.0 }
0x15e5   :  { %2836 = vadd.xlane.f32.xlu0 %v2835_v48 }
0x15fb   :  { %2918 = vrot.lane.b32.xlu0 %v5778_v0, %s5295_s3 }
0x15ff   :  { %3236 = vrot.lane.b32.xlu0 %v5778_v0, %s5294_s1 }
0x1612   :  { %v5846_v49 = vpop.f32.mrb[20].mxu0 }
0x1613   :  { %v4778_v7 = vpop.f32.mrb[21].mxu0 }
0x1616   :  { %v2736_v5 = vpop.f32.mrb[22].mxu0 }
0x1617   :  { %v4788_v50 = vpop.f32.mrb[23].mxu0  ;;  %v2818_v51 = vmul.f32 0.35355338, %v2736_v5 }
0x1619   :  { %v2820_v52 = vsel %vm296_vm2, %v2818_v51, -inf }
0x161e   :  { %2821 = vmax.xlane.f32.xlu0 %v2820_v52 }
0x1634   :  { %2842 = vrot.lane.b32.xlu0 %v5780_v2, %s5295_s3 }
0x1638   :  { %3336 = vrot.lane.b32.xlu0 %v5780_v2, %s5297_s27 }
0x163c   :  { %3573 = vrot.lane.b32.xlu0 %v5780_v2, %s5298_s28 }
0x1640   :  { %3651 = vrot.lane.b32.xlu0 %v5778_v0, %s5298_s28 }
0x1644   :  { %3571 = vrot.lane.b32.xlu0 %v5780_v2, %s5299_s6 }
0x1648   :  { %3649 = vrot.lane.b32.xlu0 %v5778_v0, %s5299_s6 }
0x1672   :  { %v2837_v53 = vpop.xlane.xlu0 %2836 }
0x1673   :  { %5038 = vrcp.f32 %v2837_v53 }
0x1676   :  { %v2919_v54 = vpop.permute.xlu0 %2918 }
0x1677   :  { %4800 = vmatpush3.msra.mxu1 %v2919_v54 }
0x1678   :  { %4814 = vmatprep.subr.mxu1 %v5288_v8 }
0x167a   :  { %v3237_v59 = vpop.permute.xlu0 %3236 }
0x167d   :  { %v5039_v56 = vpop.eup %5038 }
0x167e   :  { %v2841_v57 = vmul.f32 %v5039_v56, %v5037_v47 }
0x1680   :  { %4802 = vmatmul.mubr.msk.f32.vlgmr.msra.gmra.mrb[30].mxu1 %vm296_vm2, %v2841_v57 }
0x1681   :  { %4815 = vmatpush3.xpose.msk.msra.mxu1 %vm296_vm2, %v3159_v55  ;;  %4816 = vmatprep.mubr.msk.f32.mxu1 %vm5289_vm1, %v5288_v8 }
0x1682   :  { %4819 = vmatprep.subr.mxu1 %v5288_v8 }
0x1684   :  { %4817 = vmatmul.mubr.msk.f32.vlgmr.msra.gmra.mrb[32].mxu1 %vm296_vm2, %v3157_v58 }
0x1685   :  { %4820 = vmatpush3.xpose.msk.msra.mxu1 %vm296_vm2, %v3237_v59  ;;  %4821 = vmatprep.mubr.msk.f32.mxu1 %vm5289_vm1, %v5288_v8 }
0x1686   :  { %4829 = vmatprep.subr.mxu1 %v5288_v8 }
0x1688   :  { %4822 = vmatmul.mubr.msk.f32.vlgmr.msra.gmra.mrb[34].mxu1 %vm296_vm2, %v3235_v62 }
0x1689   :  { %4831 = vmatprep.mubr.msk.f32.mxu1 %vm5289_vm1, %v5288_v8 }
0x16ab   :  { %v2822_v63 = vpop.xlane.xlu0 %2821 }
0x16ac   :  { %v2826_v1 = vsub.f32 %v2818_v51, %v2822_v63 }
0x16ae   :  { %v2828_v3 = vmul.f32 1.442695, %v2826_v1 }
0x16af   :  { %v2843_v4 = vpop.permute.xlu0 %2842 }
0x16b0   :  { %5040 = vpow2.f32 %v2828_v3  ;;  %4795 = vmatpush3.msra.mxu0 %v2843_v4 }
0x16b1   :  { %4804 = vmatprep.subr.mxu0 %v2237_v12 }
0x16b3   :  { %v3337_v39 = vpop.permute.xlu0 %3336 }
0x16b7   :  { %v3574_v43 = vpop.permute.xlu0 %3573 }
0x16ba   :  { %v5041_v6 = vpop.eup %5040 }
0x16bb   :  { %v2832_v9 = vsel %vm296_vm2, %v5041_v6, 0.0 }
0x16bc   :  { %2833 = vadd.xlane.f32.xlu1 %v2832_v9 }
0x1749   :  { %v2834_v10 = vpop.xlane.xlu1 %2833 }
0x174a   :  { %5042 = vrcp.f32 %v2834_v10 }
0x1753   :  { %v2990_v11 = vpop.f32.mrb[30].mxu1 }
0x1754   :  { %v5043_v14 = vpop.eup %5042  ;;  %v4803_v15 = vpop.f32.mrb[31].mxu1 }
0x1755   :  { %v2840_v16 = vmul.f32 %v5043_v14, %v5041_v6 }
0x1757   :  { %4797 = vmatmul.mubr.msk.f32.vlgmr.msra.gmra.mrb[24].mxu0 %vm296_vm2, %v2840_v16  ;;  %v3230_v17 = vpop.f32.mrb[32].mxu1 }
0x1758   :  { %v3312_v18 = vmul.f32 0.35355338, %v3230_v17  ;;  %v4818_v19 = vpop.f32.mrb[33].mxu1  ;;  %4805 = vmatpush3.msra.mxu0 %v2237_v12 }
0x1759   :  { %4809 = vmatprep.subr.mxu0 %v2236_v25  ;;  %v2239_v19 = vld [vmem:[#allocation13 + $0x18] sm:$0xff] }
0x175a   :  { %v3314_v20 = vsel %vm296_vm2, %v3312_v18, -inf }
0x175b   :  { %3315 = vmax.xlane.f32.xlu1 %v3314_v20  ;;  %v3308_v21 = vpop.f32.mrb[34].mxu1 }
0x175c   :  { %v3313_v22 = vmul.f32 0.35355338, %v3308_v21  ;;  %v4823_v23 = vpop.f32.mrb[35].mxu1 }
0x175e   :  { %v3317_v24 = vsel %vm296_vm2, %v3313_v22, -inf }
0x175f   :  { %3318 = vmax.xlane.f32.xlu1 %v3317_v24 }
0x17e8   :  { %v3316_v26 = vpop.xlane.xlu1 %3315 }
0x17e9   :  { %v3320_v27 = vsub.f32 %v3312_v18, %v3316_v26 }
0x17eb   :  { %v3322_v28 = vmul.f32 1.442695, %v3320_v27 }
0x17ec   :  { %v3319_v29 = vpop.xlane.xlu1 %3318 }
0x17ed   :  { %5044 = vpow2.f32 %v3322_v28  ;;  %v3321_v30 = vsub.f32 %v3313_v22, %v3319_v29 }
0x17ef   :  { %v3324_v31 = vmul.f32 1.442695, %v3321_v30 }
0x17f1   :  { %5046 = vpow2.f32 %v3324_v31 }
0x17f7   :  { %v5045_v32 = vpop.eup %5044 }
0x17f8   :  { %v3326_v13 = vsel %vm296_vm2, %v5045_v32, 0.0 }
0x17f9   :  { %3327 = vadd.xlane.f32.xlu1 %v3326_v13 }
0x17fb   :  { %v5047_v33 = vpop.eup %5046 }
0x17fc   :  { %v3329_v34 = vsel %vm296_vm2, %v5047_v33, 0.0 }
0x17fd   :  { %3330 = vadd.xlane.f32.xlu1 %v3329_v34 }
0x180e   :  { %3412 = vrot.lane.b32.xlu1 %v5778_v0, %s5297_s27 }
0x182a   :  { %v2914_v35 = vpop.f32.mrb[24].mxu0 }
0x182b   :  { %v4798_v36 = vpop.f32.mrb[25].mxu0  ;;  %4806 = vmatprep.mubr.msk.f32.mxu0 %vm296_vm2, %v2914_v35 }
0x182c   :  { %4807 = vmatmul.mubr.msk.f32.vlgmr.msra.gmra.mrb[26].mxu0 %vm296_vm2, %v2990_v11 }
0x182d   :  { %4811 = vmatprep.mubr.msk.f32.mxu0 %vm296_vm2, %v5846_v49  ;;  %4810 = vmatpush3.msra.mxu0 %v2236_v25 }
0x182e   :  { %4824 = vmatprep.subr.mxu0 %v5288_v8 }
0x1834   :  { %4812 = vmatmul.mubr.msk.f32.vlgmr.msra.gmra.mrb[26].mxu0 %vm296_vm2, %v5825_v37  ;;  %v3652_v37 = vpop.permute.xlu0 %3651 }
0x1835   :  { %4825 = vmatpush3.msra.mxu0 %v3337_v39  ;;  %4826 = vmatprep.mubr.msk.f32.mxu0 %vm5289_vm1, %v5288_v8 }
0x1836   :  { %4834 = vmatprep.subr.mxu0 %v2238_v38 }
0x1838   :  { %v3572_v48 = vpop.permute.xlu0 %3571 }
0x183c   :  { %v3650_v51 = vpop.permute.xlu0 %3649 }
0x1886   :  { %v3328_v40 = vpop.xlane.xlu1 %3327 }
0x1887   :  { %5048 = vrcp.f32 %v3328_v40 }
0x188a   :  { %v3331_v41 = vpop.xlane.xlu1 %3330 }
0x188b   :  { %5050 = vrcp.f32 %v3331_v41 }
0x188e   :  { %v3413_v42 = vpop.permute.xlu1 %3412 }
0x188f   :  { %4830 = vmatpush3.msra.mxu1 %v3413_v42 }
0x1890   :  { %4839 = vmatprep.subr.mxu1 %v5288_v8 }
0x1891   :  { %v5049_v44 = vpop.eup %5048 }
0x1892   :  { %v3334_v45 = vmul.f32 %v5049_v44, %v5045_v32 }
0x1894   :  { %4827 = vmatmul.mubr.msk.f32.vlgmr.msra.gmra.mrb[28].mxu0 %vm296_vm2, %v3334_v45  ;;  %v4043_v45 = vld [vmem:[#allocation14 + $0x10] sm:$0xff] }
0x1895   :  { %v5051_v46 = vpop.eup %5050  ;;  %4835 = vmatpush3.msra.mxu0 %v2238_v38 }
0x1896   :  { %v3335_v47 = vmul.f32 %v5051_v46, %v5047_v33  ;;  %4844 = vmatprep.subr.mxu0 %v5288_v8  ;;  %v4044_v46 = vld [vmem:[#allocation14 + $0x18] sm:$0xff] }
0x1898   :  { %4832 = vmatmul.mubr.msk.f32.vlgmr.msra.gmra.mrb[36].mxu1 %vm296_vm2, %v3335_v47  ;;  %v4135_v47 = vld [vmem:[%s6022_s19] sm:$0xff] }
0x1899   :  { %4840 = vmatpush3.xpose.msk.msra.mxu1 %vm296_vm2, %v3574_v43  ;;  %4841 = vmatprep.mubr.msk.f32.mxu1 %vm5289_vm1, %v5288_v8  ;;  %v4042_v43 = vld [vmem:[#allocation14 + $0x8] sm:$0xff] }
0x189a   :  { %4849 = vmatprep.subr.mxu1 %v5288_v8 }
0x189c   :  { %4842 = vmatmul.mubr.msk.f32.vlgmr.msra.gmra.mrb[38].mxu1 %vm296_vm2, %v3572_v48  ;;  %v4136_v48 = vld [vmem:[%s6022_s19 + $0x8] sm:$0xff] }
0x189d   :  { %4851 = vmatprep.mubr.msk.f32.mxu1 %vm5289_vm1, %v5288_v8 }
0x1967   :  { %v3408_v49 = vpop.f32.mrb[28].mxu0 }
0x1968   :  { %v4828_v7 = vpop.f32.mrb[29].mxu0  ;;  %4836 = vmatprep.mubr.msk.f32.mxu0 %vm296_vm2, %v3408_v49  ;;  %v4937_v49 = vpack.c.bf16 %v4136_v48, %v4135_v47  ;;  %v4488_v48 = vld [vmem:[%s6027_s24] ss:$0 sm:$0xff] }
0x196b   :  { %v3484_v5 = vpop.f32.mrb[36].mxu1 }
0x196c   :  { %v4833_v50 = vpop.f32.mrb[37].mxu1  ;;  %4837 = vmatmul.mubr.msk.f32.vlgmr.msra.gmra.mrb[26].mxu0 %vm296_vm2, %v3484_v5 }
0x196d   :  { %4845 = vmatpush3.xpose.msk.msra.mxu0 %vm296_vm2, %v3652_v37  ;;  %4846 = vmatprep.mubr.msk.f32.mxu0 %vm5289_vm1, %v5288_v8  ;;  %v4933_v37 = vpack.c.bf16 %v4044_v46, %v4043_v45  ;;  %v4487_v46 = vld [vmem:[%s6026_s23] ss:$0 sm:$0xff] }
0x196e   :  { %4854 = vmatprep.subr.mxu0 %v5288_v8 }
0x196f   :  { %v3645_v52 = vpop.f32.mrb[38].mxu1 }
0x1970   :  { %v3727_v53 = vmul.f32 0.35355338, %v3645_v52  ;;  %v4843_v54 = vpop.f32.mrb[39].mxu1  ;;  %4847 = vmatmul.mubr.msk.f32.vlgmr.msra.gmra.mrb[30].mxu0 %vm296_vm2, %v3650_v51 }
0x1971   :  { %4856 = vmatprep.mubr.msk.f32.mxu0 %vm5289_vm1, %v5288_v8 }
0x1972   :  { %v3729_v55 = vsel %vm296_vm2, %v3727_v53, -inf }
0x1973   :  { %3730 = vmax.xlane.f32.xlu1 %v3729_v55  ;;  %v4479_v55 = vld [vmem:[%s6024_s21] ss:$0 sm:$0xff] }
0x1a00   :  { %v3731_v56 = vpop.xlane.xlu1 %3730 }
0x1a01   :  { %v3735_v57 = vsub.f32 %v3727_v53, %v3731_v56 }
0x1a03   :  { %v3737_v58 = vmul.f32 1.442695, %v3735_v57 }
0x1a05   :  { %5052 = vpow2.f32 %v3737_v58 }
0x1a0f   :  { %v5053_v3 = vpop.eup %5052 }
0x1a10   :  { %v3741_v4 = vsel %vm296_vm2, %v5053_v3, 0.0 }
0x1a43   :  { %v3723_v59 = vpop.f32.mrb[30].mxu0 }
0x1a44   :  { %v3728_v62 = vmul.f32 0.35355338, %v3723_v59  ;;  %v4848_v63 = vpop.f32.mrb[31].mxu0  ;;  %v4480_v59 = vld [vmem:[%s6025_s22] ss:$0 sm:$0xff] }
0x1a46   :  { %v3732_v1 = vsel %vm296_vm2, %v3728_v62, -inf }
0x1a47   :  { %3733 = vmax.xlane.f32.xlu0 %v3732_v1 }
0x1a4b   :  { %3742 = vadd.xlane.f32.xlu0 %v3741_v4  ;;  %v4137_v4 = vld [vmem:[%s6022_s19 + $0x10] sm:$0xff] }
0x1a61   :  { %3751 = vrot.lane.b32.xlu0 %v5780_v2, %s5300_s30 }
0x1ad4   :  { %v3734_v6 = vpop.xlane.xlu0 %3733 }
0x1ad5   :  { %v3736_v9 = vsub.f32 %v3728_v62, %v3734_v6  ;;  %v4138_v6 = vld [vmem:[%s6022_s19 + $0x18] sm:$0xff] }
0x1ad7   :  { %v3739_v10 = vmul.f32 1.442695, %v3736_v9  ;;  %v4941_v9 = vpack.c.bf16 %v4138_v6, %v4137_v4 }
0x1ad8   :  { %v3743_v11 = vpop.xlane.xlu0 %3742 }
0x1ad9   :  { %5054 = vpow2.f32 %v3739_v10  ;;  %v4481_v10 = vld [vmem:[%s6021_s18] ss:$0 sm:$0xff] }
0x1ada   :  { %5056 = vrcp.f32 %v3743_v11 }
0x1adc   :  { %v3752_v14 = vpop.permute.xlu0 %3751 }
0x1add   :  { %4850 = vmatpush3.msra.mxu1 %v3752_v14 }
0x1ae3   :  { %v5055_v15 = vpop.eup %5054 }
0x1ae4   :  { %v5057_v16 = vpop.eup %5056  ;;  %v3744_v17 = vsel %vm296_vm2, %v5055_v15, 0.0 }
0x1ae5   :  { %v3749_v18 = vmul.f32 %v5057_v16, %v5053_v3  ;;  %3745 = vadd.xlane.f32.xlu1 %v3744_v17 }
0x1ae7   :  { %4852 = vmatmul.mubr.msk.f32.vlgmr.msra.gmra.mrb[40].mxu1 %vm296_vm2, %v3749_v18  ;;  %v4484_v18 = vld [vmem:[%s6023_s20] ss:$0 sm:$0xff] }
0x1af6   :  { %3827 = vrot.lane.b32.xlu1 %v5778_v0, %s5300_s30  ;;  %v4478_v0 = vld [vmem:[%s6019_s16] ss:$0 sm:$0xff]  ;;  %s5302_s16 = smov [#allocation16]  }
0x1af7   :  { %s4384_s11 = sshll.u32 %s5302_s16, 4  ;;  %s4385_s11 = int_to_ptr.vmem [resolvable:$true] %s4384_s11 }
0x1af8   :  { %s5244_s13 = scalar_lea.vmem %s4385_s11, 32  ;;  %p5249_p9 = scmp.lt.s32.totalorder %s4385_s11, %s4385_s11 }
0x1af9   :  { %p5245_p8 = scmp.ne.s32.totalorder %s4385_s11, %s5244_s13  ;;  %p5250_p10 = scmp.lt.s32.totalorder %s5244_s13, %s5244_s13 }
0x1afb   :  { %p5251_p11 = por %p5250_p10, %p5249_p9 }
0x1afd   :  { %p5252_p12 = pnand %p5251_p11, %p5245_p8 }
0x1b72   :  { %v3746_v2 = vpop.xlane.xlu1 %3745 }
0x1b73   :  { %5058 = vrcp.f32 %v3746_v2 }
0x1b76   :  { %v3828_v20 = vpop.permute.xlu1 %3827 }
0x1b77   :  { %4855 = vmatpush3.msra.mxu0 %v3828_v20 }
0x1b78   :  { %4859 = vmatprep.subr.mxu0 %v2239_v19 }
0x1b7d   :  { %v5059_v21 = vpop.eup %5058 }
0x1b7e   :  { %v3750_v22 = vmul.f32 %v5059_v21, %v5055_v15 }
0x1b80   :  { %4857 = vmatmul.mubr.msk.f32.vlgmr.msra.gmra.mrb[32].mxu0 %vm296_vm2, %v3750_v22 }
0x1b81   :  { %4860 = vmatpush3.msra.mxu0 %v2239_v19 }
0x1b82   :  { %4938 = vmatprep.subr.bf16.mxu0 %v4937_v49 }
0x1bba   :  { %v3823_v23 = vpop.f32.mrb[40].mxu1 }
0x1bbb   :  { %v4853_v24 = vpop.f32.mrb[41].mxu1  ;;  %4861 = vmatprep.mubr.msk.f32.mxu0 %vm296_vm2, %v3823_v23 }
0x1c53   :  { %v3899_v12 = vpop.f32.mrb[32].mxu0 }
0x1c54   :  { %v4858_v25 = vpop.f32.mrb[33].mxu0  ;;  %4862 = vmatmul.mubr.msk.f32.vlgmr.msra.gmra.mrb[26].mxu0 %vm296_vm2, %v3899_v12 }
0x1c55   :  { %4940 = vmatpush3.bf16.msra.mxu0 %v4937_v49 }
0x1c56   :  { %4942 = vmatprep.subr.bf16.mxu0 %v4941_v9 }
0x1c59   :  { %4944 = vmatpush3.bf16.msra.mxu0 %v4941_v9 }
0x1d27   :  { %v4863_v26 = vpop.f32.mrb[26].mxu0 }
0x1d28   :  { %v3994_v27 = vadd.f32 %v4863_v26, %v4478_v0  ;;  %v3975_v28 = vpop.f32.mrb[27].mxu0 }
0x1d29   :  { %v3993_v29 = vadd.f32 %v4478_v0, %v3975_v28 }
0x1d2a   :  { %v3996_v30 = vadd.f32 %v3994_v27, %v5767_v61 }
0x1d2b   :  { %v3995_v31 = vadd.f32 %v3993_v29, %v5765_v60  ;;  %v4041_v60 = vld [vmem:[#allocation14] sm:$0xff] }
0x1d2c   :  { %v4002_v32 = vsel %vm211_vm0, %v3996_v30, 0.0  ;;  %v4929_v44 = vpack.c.bf16 %v4042_v43, %v4041_v60 }
0x1d2d   :  { %4003 = vadd.xlane.f32.xlu0 %v4002_v32  ;;  %v3999_v13 = vsel %vm211_vm0, %v3995_v31, 0.0 }
0x1d2e   :  { %4000 = vadd.xlane.f32.xlu1 %v3999_v13  ;;  %4930 = vmatprep.subr.bf16.mxu1 %v4929_v44 }
0x1d2f   :  { %4932 = vmatpush3.bf16.msra.mxu1 %v4929_v44 }
0x1d30   :  { %4934 = vmatprep.subr.bf16.mxu1 %v4933_v37 }
0x1d33   :  { %4936 = vmatpush3.bf16.msra.mxu1 %v4933_v37 }
0x1dba   :  { %v4004_v33 = vpop.xlane.xlu0 %4003 }
0x1dbb   :  { %v4006_v34 = vmul.f32 0.03125, %v4004_v33  ;;  %v4001_v35 = vpop.xlane.xlu1 %4000  ;;  %v4289_v33 = vld [vmem:[%s6028_s25] sm:$0xff] }
0x1dbc   :  { %v4005_v36 = vmul.f32 0.03125, %v4001_v35  ;;  %v4291_v35 = vld [vmem:[%s6028_s25 + $0x10] sm:$0xff] }
0x1dbd   :  { %v4008_v38 = vsub.f32 %v3996_v30, %v4006_v34  ;;  %v4290_v34 = vld [vmem:[%s6028_s25 + $0x8] sm:$0xff] }
0x1dbe   :  { %v4007_v39 = vsub.f32 %v3995_v31, %v4005_v36  ;;  %v5301_v36 = vmov 0.0|0.0  }
0x1dbf   :  { %v4010_v40 = vmul.f32 %v4008_v38, %v4008_v38  ;;  %4945 = vmatprep.subr.bf16.mxu1 %v5301_v36 }
0x1dc0   :  { %v4009_v41 = vmul.f32 %v4007_v39, %v4007_v39 }
0x1dc1   :  { %v4014_v42 = vsel %vm211_vm0, %v4010_v40, 0.0 }
0x1dc2   :  { %4015 = vadd.xlane.f32.xlu1 %v4014_v42  ;;  %v4011_v61 = vsel %vm211_vm0, %v4009_v41, 0.0 }
0x1dc3   :  { %4012 = vadd.xlane.f32.xlu0 %v4011_v61 }
0x1e4f   :  { %v4016_v7 = vpop.xlane.xlu1 %4015 }
0x1e50   :  { %v4018_v5 = vmul.f32 0.03125, %v4016_v7  ;;  %v4013_v50 = vpop.xlane.xlu0 %4012 }
0x1e51   :  { %v4017_v51 = vmul.f32 0.03125, %v4013_v50 }
0x1e52   :  { %v4020_v52 = vadd.f32 1e-05, %v4018_v5 }
0x1e53   :  { %v4019_v53 = vadd.f32 1e-05, %v4017_v51 }
0x1e54   :  { %5060 = vrsqrt.f32 %v4020_v52 }
0x1e55   :  { %5062 = vrsqrt.f32 %v4019_v53 }
0x1e5e   :  { %v5061_v54 = vpop.eup %5060 }
0x1e5f   :  { %v5063_v56 = vpop.eup %5062  ;;  %v4024_v57 = vmul.f32 %v5061_v54, %v4008_v38  ;;  %v4946_v38 = vpack.c.bf16 %v4290_v34, %v4289_v33 }
0x1e60   :  { %v4023_v58 = vmul.f32 %v5063_v56, %v4007_v39  ;;  %v4292_v39 = vld [vmem:[%s6028_s25 + $0x18] sm:$0xff] }
0x1e61   :  { %v4032_v62 = vmul.f32 %v4479_v55, %v4024_v57  ;;  %v4949_v40 = vpack.c.bf16 %v4292_v39, %v4291_v35 }
0x1e62   :  { %v4031_v63 = vmul.f32 %v4479_v55, %v4023_v58 }
0x1e63   :  { %v4040_v3 = vadd.f32 %v4480_v59, %v4032_v62 }
0x1e64   :  { %v4039_v1 = vadd.f32 %v4480_v59, %v4031_v63 }
0x1e66   :  { %4872 = vmatprep.mubr.msk.f32.mxu1 %vm211_vm0, %v4039_v1 }
0x1e67   :  { %4873 = vmatmul.mubr.msk.f32.vlgmr.msra.gmra.mrb[42].mxu1 %vm211_vm0, %v4040_v3 }
0x1e68   :  { %4894 = vmatprep.mubr.msk.f32.mxu1 %vm5289_vm1, %v5288_v8  ;;  %4947 = vmatpush3.bf16.msra.mxu1 %v4946_v38 }
0x1e69   :  { %4948 = vmatprep.subr.bf16.mxu1 %v5301_v36 }
0x1e6c   :  { %4950 = vmatpush3.bf16.msra.mxu1 %v4949_v40 }
0x1f3a   :  { %v4874_v11 = vpop.f32.mrb[42].mxu1 }
0x1f3b   :  { %v4130_v14 = vadd.f32 %v4874_v11, %v4481_v10  ;;  %v4124_v15 = vpop.f32.mrb[43].mxu1 }
0x1f3c   :  { %v4125_v16 = vadd.f32 %v4481_v10, %v4124_v15 }
0x1f3d   :  { %v4134_v17 = vmax.f32 %v4130_v14, 0.0  ;;  %v4489_v14 = vld [vmem:[%s6064_s14] ss:$0 sm:$0xff] }
0x1f3e   :  { %v4133_v8 = vmax.f32 %v4125_v16, 0.0 }
0x1f40   :  { %4883 = vmatprep.mubr.msk.f32.mxu0 %vm211_vm0, %v4133_v8 }
0x1f41   :  { %4884 = vmatmul.mubr.msk.f32.vlgmr.msra.gmra.mrb[34].mxu0 %vm211_vm0, %v4134_v17 }
0x2014   :  { %v4885_v2 = vpop.f32.mrb[34].mxu0 }
0x2015   :  { %v4224_v19 = vadd.f32 %v4885_v2, %v4484_v18  ;;  %v4218_v20 = vpop.f32.mrb[35].mxu0 }
0x2016   :  { %v4219_v21 = vadd.f32 %v4484_v18, %v4218_v20 }
0x2017   :  { %v4228_v22 = vadd.f32 %v4224_v19, %v4040_v3 }
0x2018   :  { %v4227_v23 = vadd.f32 %v4219_v21, %v4039_v1 }
0x2019   :  { %v4234_v24 = vsel %vm211_vm0, %v4228_v22, 0.0 }
0x201a   :  { %4235 = vadd.xlane.f32.xlu1 %v4234_v24  ;;  %v4231_v12 = vsel %vm211_vm0, %v4227_v23, 0.0 }
0x201b   :  { %4232 = vadd.xlane.f32.xlu0 %v4231_v12 }
0x20a7   :  { %v4236_v25 = vpop.xlane.xlu1 %4235 }
0x20a8   :  { %v4238_v0 = vmul.f32 0.03125, %v4236_v25  ;;  %v4233_v26 = vpop.xlane.xlu0 %4232 }
0x20a9   :  { %v4237_v27 = vmul.f32 0.03125, %v4233_v26 }
0x20aa   :  { %v4240_v28 = vsub.f32 %v4228_v22, %v4238_v0 }
0x20ab   :  { %v4239_v29 = vsub.f32 %v4227_v23, %v4237_v27 }
0x20ac   :  { %v4242_v30 = vmul.f32 %v4240_v28, %v4240_v28 }
0x20ad   :  { %v4241_v31 = vmul.f32 %v4239_v29, %v4239_v29 }
0x20ae   :  { %v4246_v32 = vsel %vm211_vm0, %v4242_v30, 0.0 }
0x20af   :  { %4247 = vadd.xlane.f32.xlu1 %v4246_v32  ;;  %v4243_v13 = vsel %vm211_vm0, %v4241_v31, 0.0 }
0x20b0   :  { %4244 = vadd.xlane.f32.xlu0 %v4243_v13 }
0x213c   :  { %v4248_v41 = vpop.xlane.xlu1 %4247 }
0x213d   :  { %v4250_v42 = vmul.f32 0.03125, %v4248_v41  ;;  %v4245_v61 = vpop.xlane.xlu0 %4244 }
0x213e   :  { %v4249_v60 = vmul.f32 0.03125, %v4245_v61 }
0x213f   :  { %v4252_v43 = vadd.f32 1e-05, %v4250_v42 }
0x2140   :  { %v4251_v44 = vadd.f32 1e-05, %v4249_v60 }
0x2141   :  { %5064 = vrsqrt.f32 %v4252_v43 }
0x2142   :  { %5066 = vrsqrt.f32 %v4251_v44 }
0x214b   :  { %v5065_v45 = vpop.eup %5064 }
0x214c   :  { %v5067_v37 = vpop.eup %5066  ;;  %v4256_v47 = vmul.f32 %v5065_v45, %v4240_v28 }
0x214d   :  { %v4255_v49 = vmul.f32 %v5067_v37, %v4239_v29 }
0x214e   :  { %v4264_v7 = vmul.f32 %v4487_v46, %v4256_v47 }
0x214f   :  { %v4263_v5 = vmul.f32 %v4487_v46, %v4255_v49 }
0x2150   :  { %v4272_v50 = vadd.f32 %v4488_v48, %v4264_v7 }
0x2151   :  { %v4271_v51 = vadd.f32 %v4488_v48, %v4263_v5 }
0x2152   :  { %v4280_v52 = vsel %vm211_vm0, %v4272_v50, 0.0 }
0x2153   :  { %v4273_v53 = vsel %vm211_vm0, %v4271_v51, 0.0  ;;  %v4281_v54 = vrot.slane %v4280_v52, 4 }
0x2154   :  { %v4274_v55 = vrot.slane %v4273_v53, 4 }
0x2155   :  { %v4282_v56 = vadd.f32 %v4281_v54, %v4280_v52 }
0x2156   :  { %v4275_v57 = vadd.f32 %v4274_v55, %v4273_v53 }
0x2157   :  { %v4283_v58 = vrot.slane %v4282_v56, 2 }
0x2158   :  { %v4276_v59 = vrot.slane %v4275_v57, 2 }
0x2159   :  { %v4284_v62 = vadd.f32 %v4283_v58, %v4282_v56 }
0x215a   :  { %v4277_v63 = vadd.f32 %v4276_v59, %v4275_v57 }
0x215b   :  { %v4285_v1 = vrot.slane %v4284_v62, 1 }
0x215c   :  { %v4278_v3 = vrot.slane %v4277_v63, 1 }
0x215d   :  { %v4286_v4 = vadd.f32 %v4285_v1, %v4284_v62 }
0x215e   :  { %v4279_v6 = vadd.f32 %v4278_v3, %v4277_v63 }
0x215f   :  { %v4288_v9 = vmul.f32 0.125, %v4286_v4 }
0x2160   :  { %v4287_v10 = vmul.f32 0.125, %v4279_v6 }
0x2162   :  { %v4303_v11 = vsel %vm4302_vm3, %v4288_v9, %v4287_v10 }
0x2163   :  { %4895 = vmatmul.mubr.msk.f32.vlgmr.msra.gmra.mrb[44].mxu1 %vm211_vm0, %v4303_v11 }
0x2236   :  { %v4372_v15 = vpop.f32.mrb[44].mxu1 }
0x2237   :  { %v4373_v16 = vadd.f32 %v4489_v14, %v4372_v15  ;;  %v4896_v8 = vpop.f32.mrb[45].mxu1 }
0x2239   :  { %4377 = vst.msk [vmem:[#allocation16] sm:$0x3] %vm4376_vm4, %v4373_v16 }
0x223a   :  { %5255 = shalt.err (!%p5252_p12)
}
0x223b   :  { %s6065_s1 = sld [smem:[#allocation36_spill]] }
0x2241   :  { %s5256_s3 = scalar_lea.hbm %s6065_s1, 32 }
0x2242   :  { %p5257_p13 = scmp.ne.s32.totalorder %s6065_s1, %s5256_s3  ;;  %p5260_p0 = scmp.lt.u32.totalorder %s5256_s3, %s6065_s1 }
0x2244   :  { %p5262_p1 = pnand %p5260_p0, %p5257_p13 }
0x2246   :  { %5265 = shalt.err (!%p5262_p1)
}
0x2247   :  { %4387 = dma.vmem_to_hbm [thread:$0]  %s4385_s11, 32, %s6065_s1, [#allocation4]  }
0x2248   :  { %5276 = dma.done.wait [#allocation4], 32  }
0x2249   :  { %5277 = vsyncadd [#allocation4], 4294967264 }
0x224a   :  { %4391 = vsyncpa [#allocation3], 1 }
0x224b   :  { %4392 = vsyncpa [#allocation6], 1 }
0x224c   :  { %4393 = vsyncpa [#allocation9], 1 }
0x224d   :  { %4394 = vsyncpa [#allocation12], 1 }
0x224e   :  { %4395 = vsyncpa [#allocation15], 1 }
0x224f   :  { %4396 = vsyncpa [#allocation4], 1 }

</bundles_post_ra>
